<compile_context>
chip_gen: v5e
topology: v5e:2x2
jax: 0.10.0
libtpu: 0.0.40
codegen_flags: <defaults>
</compile_context>

<pallas_src>
import functools
import math

import jax
import jax.numpy as jnp
from jax.experimental import pallas as pl
from jax.experimental.pallas import tpu as pltpu

COORD_DIM = 3
EMBED_DIM = 512
LN_EPS = 1e-5
DEFAULT_TM = 256  # batch tile: multiple of 256 (v6e/v7x MXU) and of 128 (v5e MXU)


def _round_up(x, m):
    return (x + m - 1) // m * m


def _coord_predictor_kernel(coords_ref, we_ref, be_ref, wp_ref, bp_ref,
                            gamma_ref, beta_ref, o_ref):
    # ---- Coordinate embedder: Linear(coord_dim -> 512) on the VPU ----
    # A K=3 contraction would waste a whole MXU systolic pass; three broadcast
    # FMAs keep the MXU free for the real 512x512 projection.
    x = coords_ref[...]                                   # (TM, COORD_DIM) f32
    we = we_ref[...]                                      # (COORD_DIM, 512) f32
    h = be_ref[...] + x[:, 0:1] * we[0:1, :]
    for d in range(1, COORD_DIM):                         # unrolled at trace time
        h = h + x[:, d:d + 1] * we[d:d + 1, :]            # (TM, 512) f32

    # ---- Projection Linear(512 -> 512): bf16 inputs on the MXU, f32 accumulation ----
    h = jnp.dot(h.astype(jnp.bfloat16), wp_ref[...],
                preferred_element_type=jnp.float32) + bp_ref[...]   # (TM, 512) f32

    # ---- LayerNorm over the feature axis (f32 epilogue) ----
    mean = jnp.mean(h, axis=-1, keepdims=True)
    centered = h - mean
    var = jnp.mean(centered * centered, axis=-1, keepdims=True)
    h = centered * jax.lax.rsqrt(var + LN_EPS) * gamma_ref[...] + beta_ref[...]

    # ---- GELU (exact erf form; matches torch.nn.GELU default) ----
    # TODO(synk): tanh-approximate GELU would route through the EUP slot (cheaper)
    # but changes numerics vs. the PyTorch module, so exact erf is kept.
    out = 0.5 * h * (1.0 + jax.lax.erf(h * (1.0 / math.sqrt(2.0))))

    o_ref[...] = out.astype(o_ref.dtype)


@functools.partial(jax.jit, static_argnames=("tm",))
def coordinate_predictor(coords, w_embed, b_embed, w_proj, b_proj,
                         ln_gamma, ln_beta, *, tm=DEFAULT_TM):
    """coords: (B, coord_dim) f32 -> (B, EMBED_DIM) f32."""
    B = coords.shape[0]
    tm = min(tm, _round_up(B, 8))        # small-batch case: one sublane-aligned tile
    grid = (pl.cdiv(B, tm),)

    # Halve the dominant HBM traffic (512x512 weight) + feed the bf16 MXU arrays.
    w_proj_bf16 = w_proj.astype(jnp.bfloat16)

    flops = 2 * B * EMBED_DIM * (EMBED_DIM + COORD_DIM) + 10 * B * EMBED_DIM
    bytes_accessed = (B * COORD_DIM * 4 + B * EMBED_DIM * 4          # coords + out
                      + EMBED_DIM * EMBED_DIM * 2                    # bf16 w_proj
                      + (COORD_DIM + 4) * EMBED_DIM * 4)             # small params
    cost = pl.CostEstimate(flops=flops,
                           transcendentals=B * EMBED_DIM,
                           bytes_accessed=bytes_accessed)

    const = lambda i: (0, 0)   # weights/biases: same block every step -> VMEM-resident
    return pl.pallas_call(
        _coord_predictor_kernel,
        out_shape=jax.ShapeDtypeStruct((B, EMBED_DIM), jnp.float32),
        grid=grid,
        in_specs=[
            pl.BlockSpec((tm, COORD_DIM), lambda i: (i, 0)),     # coords tile
            pl.BlockSpec((COORD_DIM, EMBED_DIM), const),         # w_embed (3, 512)
            pl.BlockSpec((1, EMBED_DIM), const),                 # b_embed (1, 512)
            pl.BlockSpec((EMBED_DIM, EMBED_DIM), const),         # w_proj  (512, 512) bf16
            pl.BlockSpec((1, EMBED_DIM), const),                 # b_proj  (1, 512)
            pl.BlockSpec((1, EMBED_DIM), const),                 # ln_gamma
            pl.BlockSpec((1, EMBED_DIM), const),                 # ln_beta
        ],
        out_specs=pl.BlockSpec((tm, EMBED_DIM), lambda i: (i, 0)),
        compiler_params=pltpu.CompilerParams(
            dimension_semantics=("parallel",)),   # megacore-shard the batch (v7x)
        cost_estimate=cost,
    )(coords, w_embed, b_embed, w_proj_bf16, b_proj, ln_gamma, ln_beta)


def init_params(key):
    """Deterministic parameter init (shapes follow the PyTorch module)."""
    k0, k1, k2, k3 = jax.random.split(key, 4)
    lim_e = 1.0 / math.sqrt(COORD_DIM)
    w_embed = jax.random.uniform(k0, (COORD_DIM, EMBED_DIM), jnp.float32, -lim_e, lim_e)
    b_embed = jax.random.uniform(k1, (1, EMBED_DIM), jnp.float32, -lim_e, lim_e)
    lim_p = 1.0 / math.sqrt(EMBED_DIM)
    w_proj = jax.random.uniform(k2, (EMBED_DIM, EMBED_DIM), jnp.float32, -lim_p, lim_p)
    b_proj = jax.random.uniform(k3, (1, EMBED_DIM), jnp.float32, -lim_p, lim_p)
    ln_gamma = jnp.ones((1, EMBED_DIM), jnp.float32)
    ln_beta = jnp.zeros((1, EMBED_DIM), jnp.float32)
    return w_embed, b_embed, w_proj, b_proj, ln_gamma, ln_beta


def reference(coords, w_embed, b_embed, w_proj, b_proj, ln_gamma, ln_beta):
    """Pure-JAX reference (mirrors the kernel's bf16 projection matmul, f32 elsewhere)."""
    h = coords @ w_embed + b_embed
    h = jnp.dot(h.astype(jnp.bfloat16), w_proj.astype(jnp.bfloat16),
                preferred_element_type=jnp.float32) + b_proj
    mean = jnp.mean(h, axis=-1, keepdims=True)
    var = jnp.mean((h - mean) ** 2, axis=-1, keepdims=True)
    h = (h - mean) / jnp.sqrt(var + LN_EPS) * ln_gamma + ln_beta
    return 0.5 * h * (1.0 + jax.lax.erf(h / math.sqrt(2.0)))


if __name__ == "__main__":
    key = jax.random.PRNGKey(0)
    k_coords, k_params = jax.random.split(key)

    B = 8  # small demo batch, sublane-aligned
    coords = jax.random.normal(k_coords, (B, COORD_DIM), jnp.float32)
    params = init_params(k_params)

    out = coordinate_predictor(coords, *params)
    out = jax.block_until_ready(out)

    ref = reference(coords, *params)
    assert out.shape == (B, EMBED_DIM), out.shape
    assert jnp.allclose(out, ref, atol=1e-2, rtol=1e-2), \
        f"max err {jnp.max(jnp.abs(out - ref))}"

    print("KERNEL_OK")
</pallas_src>

<mosaic_0001>
module attributes {stable_mosaic.version = 11 : i64} {
  func.func @_coord_predictor_kernel(%arg0: i32, %arg1: memref<8x3xf32, #tpu.memory_space<vmem>>, %arg2: memref<3x512xf32, #tpu.memory_space<vmem>>, %arg3: memref<1x512xf32, #tpu.memory_space<vmem>>, %arg4: memref<512x512xbf16, #tpu.memory_space<vmem>>, %arg5: memref<1x512xf32, #tpu.memory_space<vmem>>, %arg6: memref<1x512xf32, #tpu.memory_space<vmem>>, %arg7: memref<1x512xf32, #tpu.memory_space<vmem>>, %arg8: memref<8x512xf32, #tpu.memory_space<vmem>>) attributes {dimension_semantics = [#tpu.dimension_semantics<parallel>], iteration_bounds = array<i64: 1>, scalar_prefetch = 0 : i64, scratch_operands = 0 : i64, tpu.core_type = #tpu.core_type<tc>, window_params = [{transform_indices = @transform_0, window_bounds = array<i64: 8, 3>}, {pipeline_mode = #tpu.pipeline_mode<synchronous>, transform_indices = @transform_1, window_bounds = array<i64: 3, 512>}, {pipeline_mode = #tpu.pipeline_mode<synchronous>, transform_indices = @transform_2, window_bounds = array<i64: 1, 512>}, {pipeline_mode = #tpu.pipeline_mode<synchronous>, transform_indices = @transform_3, window_bounds = array<i64: 512, 512>}, {pipeline_mode = #tpu.pipeline_mode<synchronous>, transform_indices = @transform_4, window_bounds = array<i64: 1, 512>}, {pipeline_mode = #tpu.pipeline_mode<synchronous>, transform_indices = @transform_5, window_bounds = array<i64: 1, 512>}, {pipeline_mode = #tpu.pipeline_mode<synchronous>, transform_indices = @transform_6, window_bounds = array<i64: 1, 512>}, {transform_indices = @transform_7, window_bounds = array<i64: 8, 512>}]} {
    %c0 = arith.constant 0 : index
    %c0_0 = arith.constant 0 : index
    %0 = vector.load %arg1[%c0, %c0_0] : memref<8x3xf32, #tpu.memory_space<vmem>>, vector<8x3xf32>
    %c0_1 = arith.constant 0 : index
    %c0_2 = arith.constant 0 : index
    %1 = vector.load %arg2[%c0_1, %c0_2] : memref<3x512xf32, #tpu.memory_space<vmem>>, vector<3x512xf32>
    %c0_3 = arith.constant 0 : index
    %c0_4 = arith.constant 0 : index
    %2 = vector.load %arg3[%c0_3, %c0_4] : memref<1x512xf32, #tpu.memory_space<vmem>>, vector<1x512xf32>
    %3 = vector.extract_strided_slice %0 {offsets = [0, 0], sizes = [8, 1], strides = [1, 1]} : vector<8x3xf32> to vector<8x1xf32>
    %4 = vector.extract_strided_slice %1 {offsets = [0, 0], sizes = [1, 512], strides = [1, 1]} : vector<3x512xf32> to vector<1x512xf32>
    %5 = vector.broadcast %3 : vector<8x1xf32> to vector<8x512xf32>
    %6 = vector.broadcast %4 : vector<1x512xf32> to vector<8x512xf32>
    %7 = arith.mulf %5, %6 : vector<8x512xf32>
    %8 = vector.broadcast %2 : vector<1x512xf32> to vector<8x512xf32>
    %9 = arith.addf %8, %7 : vector<8x512xf32>
    %10 = vector.extract_strided_slice %0 {offsets = [0, 1], sizes = [8, 1], strides = [1, 1]} : vector<8x3xf32> to vector<8x1xf32>
    %11 = vector.extract_strided_slice %1 {offsets = [1, 0], sizes = [1, 512], strides = [1, 1]} : vector<3x512xf32> to vector<1x512xf32>
    %12 = vector.broadcast %10 : vector<8x1xf32> to vector<8x512xf32>
    %13 = vector.broadcast %11 : vector<1x512xf32> to vector<8x512xf32>
    %14 = arith.mulf %12, %13 : vector<8x512xf32>
    %15 = arith.addf %9, %14 : vector<8x512xf32>
    %16 = vector.extract_strided_slice %0 {offsets = [0, 2], sizes = [8, 1], strides = [1, 1]} : vector<8x3xf32> to vector<8x1xf32>
    %17 = vector.extract_strided_slice %1 {offsets = [2, 0], sizes = [1, 512], strides = [1, 1]} : vector<3x512xf32> to vector<1x512xf32>
    %18 = vector.broadcast %16 : vector<8x1xf32> to vector<8x512xf32>
    %19 = vector.broadcast %17 : vector<1x512xf32> to vector<8x512xf32>
    %20 = arith.mulf %18, %19 : vector<8x512xf32>
    %21 = arith.addf %15, %20 : vector<8x512xf32>
    %22 = arith.truncf %21 : vector<8x512xf32> to vector<8x512xbf16>
    %c0_5 = arith.constant 0 : index
    %c0_6 = arith.constant 0 : index
    %23 = vector.load %arg4[%c0_5, %c0_6] : memref<512x512xbf16, #tpu.memory_space<vmem>>, vector<512x512xbf16>
    %cst = arith.constant dense<0.000000e+00> : vector<8x512xf32>
    %24 = tpu.matmul %22, %23, %cst {dimension_numbers = #tpu.dot_dimension_numbers<[1], [0], [0], [1], [0, 0, 1, 1], [], []>} : vector<8x512xbf16>, vector<512x512xbf16>, vector<8x512xf32> -> vector<8x512xf32>
    %c0_7 = arith.constant 0 : index
    %c0_8 = arith.constant 0 : index
    %25 = vector.load %arg5[%c0_7, %c0_8] : memref<1x512xf32, #tpu.memory_space<vmem>>, vector<1x512xf32>
    %26 = vector.broadcast %25 : vector<1x512xf32> to vector<8x512xf32>
    %27 = arith.addf %24, %26 : vector<8x512xf32>
    %cst_9 = arith.constant dense<0.000000e+00> : vector<8xf32>
    %28 = vector.multi_reduction <add>, %27, %cst_9 [1] : vector<8x512xf32> to vector<8xf32>
    %29 = vector.shape_cast %28 : vector<8xf32> to vector<8x1xf32>
    %cst_10 = arith.constant 5.120000e+02 : f32
    %30 = vector.broadcast %cst_10 : f32 to vector<8x1xf32>
    %31 = arith.divf %29, %30 : vector<8x1xf32>
    %32 = vector.broadcast %31 : vector<8x1xf32> to vector<8x512xf32>
    %33 = arith.subf %27, %32 : vector<8x512xf32>
    %34 = arith.mulf %33, %33 : vector<8x512xf32>
    %cst_11 = arith.constant dense<0.000000e+00> : vector<8xf32>
    %35 = vector.multi_reduction <add>, %34, %cst_11 [1] : vector<8x512xf32> to vector<8xf32>
    %36 = vector.shape_cast %35 : vector<8xf32> to vector<8x1xf32>
    %cst_12 = arith.constant 5.120000e+02 : f32
    %37 = vector.broadcast %cst_12 : f32 to vector<8x1xf32>
    %38 = arith.divf %36, %37 : vector<8x1xf32>
    %cst_13 = arith.constant 9.99999974E-6 : f32
    %39 = vector.broadcast %cst_13 : f32 to vector<8x1xf32>
    %40 = arith.addf %38, %39 : vector<8x1xf32>
    %41 = math.rsqrt %40 : vector<8x1xf32>
    %42 = vector.broadcast %41 : vector<8x1xf32> to vector<8x512xf32>
    %43 = arith.mulf %33, %42 : vector<8x512xf32>
    %c0_14 = arith.constant 0 : index
    %c0_15 = arith.constant 0 : index
    %44 = vector.load %arg6[%c0_14, %c0_15] : memref<1x512xf32, #tpu.memory_space<vmem>>, vector<1x512xf32>
    %45 = vector.broadcast %44 : vector<1x512xf32> to vector<8x512xf32>
    %46 = arith.mulf %43, %45 : vector<8x512xf32>
    %c0_16 = arith.constant 0 : index
    %c0_17 = arith.constant 0 : index
    %47 = vector.load %arg7[%c0_16, %c0_17] : memref<1x512xf32, #tpu.memory_space<vmem>>, vector<1x512xf32>
    %48 = vector.broadcast %47 : vector<1x512xf32> to vector<8x512xf32>
    %49 = arith.addf %46, %48 : vector<8x512xf32>
    %cst_18 = arith.constant 5.000000e-01 : f32
    %50 = vector.broadcast %cst_18 : f32 to vector<8x512xf32>
    %51 = arith.mulf %50, %49 : vector<8x512xf32>
    %cst_19 = arith.constant 0.707106769 : f32
    %52 = vector.broadcast %cst_19 : f32 to vector<8x512xf32>
    %53 = arith.mulf %49, %52 : vector<8x512xf32>
    %54 = math.erf %53 : vector<8x512xf32>
    %cst_20 = arith.constant 1.000000e+00 : f32
    %55 = vector.broadcast %cst_20 : f32 to vector<8x512xf32>
    %56 = arith.addf %55, %54 : vector<8x512xf32>
    %57 = arith.mulf %51, %56 : vector<8x512xf32>
    %c0_21 = arith.constant 0 : index
    %c0_22 = arith.constant 0 : index
    %58 = vector.load %arg8[%c0_21, %c0_22] : memref<8x512xf32, #tpu.memory_space<vmem>>, vector<8x512xf32>
    tpu.vector_store %arg8[%c0_21, %c0_22], %57 {strides = array<i32>} : memref<8x512xf32, #tpu.memory_space<vmem>>, vector<8x512xf32>,
    return
  }
  func.func @transform_0(%arg0: i32) -> (i32, i32) {
    %c0_i32 = arith.constant 0 : i32
    %c0_i32_0 = arith.constant 0 : i32
    return %arg0, %c0_i32 : i32, i32
  }
  func.func @transform_1(%arg0: i32) -> (i32, i32) {
    %c0_i32 = arith.constant 0 : i32
    %c0_i32_0 = arith.constant 0 : i32
    %c0_i32_1 = arith.constant 0 : i32
    return %c0_i32, %c0_i32_0 : i32, i32
  }
  func.func @transform_2(%arg0: i32) -> (i32, i32) {
    %c0_i32 = arith.constant 0 : i32
    %c0_i32_0 = arith.constant 0 : i32
    %c0_i32_1 = arith.constant 0 : i32
    return %c0_i32, %c0_i32_0 : i32, i32
  }
  func.func @transform_3(%arg0: i32) -> (i32, i32) {
    %c0_i32 = arith.constant 0 : i32
    %c0_i32_0 = arith.constant 0 : i32
    %c0_i32_1 = arith.constant 0 : i32
    return %c0_i32, %c0_i32_0 : i32, i32
  }
  func.func @transform_4(%arg0: i32) -> (i32, i32) {
    %c0_i32 = arith.constant 0 : i32
    %c0_i32_0 = arith.constant 0 : i32
    %c0_i32_1 = arith.constant 0 : i32
    return %c0_i32, %c0_i32_0 : i32, i32
  }
  func.func @transform_5(%arg0: i32) -> (i32, i32) {
    %c0_i32 = arith.constant 0 : i32
    %c0_i32_0 = arith.constant 0 : i32
    %c0_i32_1 = arith.constant 0 : i32
    return %c0_i32, %c0_i32_0 : i32, i32
  }
  func.func @transform_6(%arg0: i32) -> (i32, i32) {
    %c0_i32 = arith.constant 0 : i32
    %c0_i32_0 = arith.constant 0 : i32
    %c0_i32_1 = arith.constant 0 : i32
    return %c0_i32, %c0_i32_0 : i32, i32
  }
  func.func @transform_7(%arg0: i32) -> (i32, i32) {
    %c0_i32 = arith.constant 0 : i32
    %c0_i32_0 = arith.constant 0 : i32
    return %arg0, %c0_i32 : i32, i32
  }
}

</mosaic_0001>

<bundles_post_ra>
// kernel: coordinate_predictor.1
= control target key start
LH: loop header
LB: loop body
LE: loop exit
PB: predicated region body
PF: predicated region fallthrough
CT: control target
= control target key end

     0   :  { %v2062_v2 = vmov 0   ;;  %v2063_v3 = vmov 2   ;;  %v2064_v42 = vmov 1   ;;  %s3031_s0 = inlined_call_operand.vmem [shape: f32[8,3], index: 0, kind: input, shape index: {}]   ;;  %s3032_s1 = inlined_call_operand.vmem [shape: f32[3,512], index: 1, kind: input, shape index: {}]   ;;  %s3033_s2 = inlined_call_operand.vmem [shape: f32[1,512], index: 2, kind: input, shape index: {}]   ;;  %s3034_s3 = inlined_call_operand.vmem [shape: bf16[512,512], index: 3, kind: input, shape index: {}]   ;;  %s3035_s4 = inlined_call_operand.vmem [shape: f32[1,512], index: 4, kind: input, shape index: {}]   ;;  %s3036_s5 = inlined_call_operand.vmem [shape: f32[1,512], index: 5, kind: input, shape index: {}]   ;;  %s3037_s6 = inlined_call_operand.vmem [shape: f32[1,512], index: 6, kind: input, shape index: {}]   ;;  %s3038_s7 = inlined_call_operand.hbm [shape: f32[8,512], index: 7, kind: output, shape index: {}]  }
   0x1   :  { %v27_v0 = vld [vmem:[%s3031_s0] sm:$0xff]  ;;  %2020 = vset.pattern.permute.xlu0 %v2062_v2  ;;  %2022 = vset.pattern.permute.xlu1 %v2063_v3  ;;  %v1917_v4 = vld [vmem:[%s3034_s3 + $0xec] sm:$0xf0] }
   0x2   :  { %v1485_v1 = vld [vmem:[%s3034_s3 + $0xe0] sm:$0xf]  ;;  %v1949_v6 = vld [vmem:[%s3034_s3 + $0x1ec] sm:$0xf0]  ;;  %33 = vperm.xlu0 %2020, %v27_v0   ;;  %92 = vperm.xlu1 %2022, %v27_v0  }
   0x3   :  { %v1613_v5 = vld [vmem:[%s3034_s3 + $0x1e0] sm:$0xf]  ;;  %v1486_v7 = vor.u32 %v1917_v4, %v1485_v1  ;;  %v1981_v10 = vld [vmem:[%s3034_s3 + $0x2ec] sm:$0xf0] }
   0x4   :  { %v1614_v8 = vor.u32 %v1949_v6, %v1613_v5  ;;  %v1741_v9 = vld [vmem:[%s3034_s3 + $0x2e0] sm:$0xf]  ;;  %v2013_v13 = vld [vmem:[%s3034_s3 + $0x3ec] sm:$0xf0] }
   0x5   :  { %v1869_v11 = vld [vmem:[%s3034_s3 + $0x3e0] sm:$0xf]  ;;  %v1742_v12 = vor.u32 %v1981_v10, %v1741_v9  ;;  %v1913_v15 = vld [vmem:[%s3034_s3 + $0xcc] sm:$0xf0]  ;;  %897 = vmatpush.bf16.msra.mxu0 %v1486_v7 }
   0x6   :  { %v1469_v14 = vld [vmem:[%s3034_s3 + $0xc0] sm:$0xf]  ;;  %910 = vmatpush.bf16.msra.mxu1 %v1614_v8  ;;  %v1870_v16 = vor.u32 %v2013_v13, %v1869_v11  ;;  %v1945_v19 = vld [vmem:[%s3034_s3 + $0x1cc] sm:$0xf0] }
   0x7   :  { %v1470_v17 = vor.u32 %v1913_v15, %v1469_v14  ;;  %v1597_v18 = vld [vmem:[%s3034_s3 + $0x1c0] sm:$0xf]  ;;  %923 = vmatpush.bf16.msra.mxu2 %v1742_v12  ;;  %v1977_v22 = vld [vmem:[%s3034_s3 + $0x2cc] sm:$0xf0] }
   0x8   :  { %v1725_v20 = vld [vmem:[%s3034_s3 + $0x2c0] sm:$0xf]  ;;  %v1598_v21 = vor.u32 %v1945_v19, %v1597_v18  ;;  %v2009_v24 = vld [vmem:[%s3034_s3 + $0x3cc] sm:$0xf0]  ;;  %936 = vmatpush.bf16.msra.mxu3 %v1870_v16 }
   0x9   :  { %v1853_v23 = vld [vmem:[%s3034_s3 + $0x3c0] sm:$0xf]  ;;  %v1726_v25 = vor.u32 %v1977_v22, %v1725_v20  ;;  %v1909_v28 = vld [vmem:[%s3034_s3 + $0xac] sm:$0xf0]  ;;  %898 = vmatpush.bf16.msra.mxu0 %v1470_v17 }
   0xa   :  { %v1854_v26 = vor.u32 %v2009_v24, %v1853_v23  ;;  %v1453_v27 = vld [vmem:[%s3034_s3 + $0xa0] sm:$0xf]  ;;  %v1941_v30 = vld [vmem:[%s3034_s3 + $0x1ac] sm:$0xf0]  ;;  %911 = vmatpush.bf16.msra.mxu1 %v1598_v21  ;;  %2021 = vset.pattern.permute.xlu0 %v2064_v42 }
   0xb   :  { %v1581_v29 = vld [vmem:[%s3034_s3 + $0x1a0] sm:$0xf]  ;;  %v1973_v32 = vld [vmem:[%s3034_s3 + $0x2ac] sm:$0xf0]  ;;  %v1454_v33 = vor.u32 %v1909_v28, %v1453_v27  ;;  %924 = vmatpush.bf16.msra.mxu2 %v1726_v25  ;;  %68 = vperm.xlu0 %2021, %v27_v0  }
   0xc   :  { %v1709_v31 = vld [vmem:[%s3034_s3 + $0x2a0] sm:$0xf]  ;;  %v1582_v34 = vor.u32 %v1941_v30, %v1581_v29  ;;  %v2005_v36 = vld [vmem:[%s3034_s3 + $0x3ac] sm:$0xf0]  ;;  %937 = vmatpush.bf16.msra.mxu3 %v1854_v26 }
   0xd   :  { %v1837_v35 = vld [vmem:[%s3034_s3 + $0x3a0] sm:$0xf]  ;;  %v1710_v38 = vor.u32 %v1973_v32, %v1709_v31  ;;  %v1905_v39 = vld [vmem:[%s3034_s3 + $0x8c] sm:$0xf0]  ;;  %899 = vmatpush.bf16.msra.mxu0 %v1454_v33  ;;  %v1915_v32 = vld [vmem:[%s3034_s3 + $0xe4] sm:$0xf] }
   0xe   :  { %v1437_v37 = vld [vmem:[%s3034_s3 + $0x80] sm:$0xf]  ;;  %v1937_v41 = vld [vmem:[%s3034_s3 + $0x18c] sm:$0xf0]  ;;  %v1838_v43 = vor.u32 %v2005_v36, %v1837_v35  ;;  %912 = vmatpush.bf16.msra.mxu1 %v1582_v34  ;;  %v1487_v33 = vld [vmem:[%s3034_s3 + $0xf0] sm:$0xf0] }
   0xf   :  { %v1565_v40 = vld [vmem:[%s3034_s3 + $0x180] sm:$0xf]  ;;  %v1969_v45 = vld [vmem:[%s3034_s3 + $0x28c] sm:$0xf0]  ;;  %v1438_v48 = vor.u32 %v1905_v39, %v1437_v37  ;;  %925 = vmatpush.bf16.msra.mxu2 %v1710_v38  ;;  %v1947_v34 = vld [vmem:[%s3034_s3 + $0x1e4] sm:$0xf] }
  0x10   :  { %v1693_v44 = vld [vmem:[%s3034_s3 + $0x280] sm:$0xf]  ;;  %v2001_v47 = vld [vmem:[%s3034_s3 + $0x38c] sm:$0xf0]  ;;  %v1566_v49 = vor.u32 %v1937_v41, %v1565_v40  ;;  %938 = vmatpush.bf16.msra.mxu3 %v1838_v43  ;;  %v1615_v35 = vld [vmem:[%s3034_s3 + $0x1f0] sm:$0xf0]  ;;  %v1490_v43 = vor.u32 %v1915_v32, %v1487_v33 }
  0x11   :  { %v1821_v46 = vld [vmem:[%s3034_s3 + $0x380] sm:$0xf]  ;;  %v1694_v51 = vor.u32 %v1969_v45, %v1693_v44  ;;  %v1901_v52 = vld [vmem:[%s3034_s3 + $0x6c] sm:$0xf0]  ;;  %900 = vmatpush.bf16.msra.mxu0 %v1438_v48  ;;  %v1979_v36 = vld [vmem:[%s3034_s3 + $0x2e4] sm:$0xf]  ;;  %v1618_v45 = vor.u32 %v1947_v34, %v1615_v35 }
  0x12   :  { %v1421_v50 = vld [vmem:[%s3034_s3 + $0x60] sm:$0xf]  ;;  %v1933_v54 = vld [vmem:[%s3034_s3 + $0x16c] sm:$0xf0]  ;;  %v1822_v55 = vor.u32 %v2001_v47, %v1821_v46  ;;  %913 = vmatpush.bf16.msra.mxu1 %v1566_v49  ;;  %v1743_v39 = vld [vmem:[%s3034_s3 + $0x2f0] sm:$0xf0] }
  0x13   :  { %v1549_v53 = vld [vmem:[%s3034_s3 + $0x160] sm:$0xf]  ;;  %v1965_v57 = vld [vmem:[%s3034_s3 + $0x26c] sm:$0xf0]  ;;  %v1422_v60 = vor.u32 %v1901_v52, %v1421_v50  ;;  %926 = vmatpush.bf16.msra.mxu2 %v1694_v51  ;;  %2023 = vset.pattern.permute.xlu0 %v2063_v3  ;;  %v2011_v40 = vld [vmem:[%s3034_s3 + $0x3e4] sm:$0xf] }
  0x14   :  { %v1677_v56 = vld [vmem:[%s3034_s3 + $0x260] sm:$0xf]  ;;  %v1997_v59 = vld [vmem:[%s3034_s3 + $0x36c] sm:$0xf0]  ;;  %v1550_v61 = vor.u32 %v1933_v54, %v1549_v53  ;;  %939 = vmatpush.bf16.msra.mxu3 %v1822_v55  ;;  %v1871_v41 = vld [vmem:[%s3034_s3 + $0x3f0] sm:$0xf0] }
  0x15   :  { %v1805_v58 = vld [vmem:[%s3034_s3 + $0x360] sm:$0xf]  ;;  %v1678_v63 = vor.u32 %v1965_v57, %v1677_v56  ;;  %v1897_v0 = vld [vmem:[%s3034_s3 + $0x4c] sm:$0xf0]  ;;  %901 = vmatpush.bf16.msra.mxu0 %v1422_v60  ;;  %v1911_v46 = vld [vmem:[%s3034_s3 + $0xc4] sm:$0xf] }
  0x16   :  { %v1405_v62 = vld [vmem:[%s3034_s3 + $0x40] sm:$0xf]  ;;  %v1929_v2 = vld [vmem:[%s3034_s3 + $0x14c] sm:$0xf0]  ;;  %v1806_v4 = vor.u32 %v1997_v59, %v1805_v58  ;;  %914 = vmatpush.bf16.msra.mxu1 %v1550_v61  ;;  %v1471_v47 = vld [vmem:[%s3034_s3 + $0xd0] sm:$0xf0] }
  0x17   :  { %v1533_v1 = vld [vmem:[%s3034_s3 + $0x140] sm:$0xf]  ;;  %v1961_v6 = vld [vmem:[%s3034_s3 + $0x24c] sm:$0xf0]  ;;  %v1406_v9 = vor.u32 %v1897_v0, %v1405_v62  ;;  %927 = vmatpush.bf16.msra.mxu2 %v1678_v63 }
  0x18   :  { %v1661_v5 = vld [vmem:[%s3034_s3 + $0x240] sm:$0xf]  ;;  %v1993_v8 = vld [vmem:[%s3034_s3 + $0x34c] sm:$0xf0]  ;;  %v1534_v10 = vor.u32 %v1929_v2, %v1533_v1  ;;  %940 = vmatpush.bf16.msra.mxu3 %v1806_v4 }
  0x19   :  { %v1789_v7 = vld [vmem:[%s3034_s3 + $0x340] sm:$0xf]  ;;  %v1662_v12 = vor.u32 %v1961_v6, %v1661_v5  ;;  %v1893_v13 = vld [vmem:[%s3034_s3 + $0x2c] sm:$0xf0]  ;;  %902 = vmatpush.bf16.msra.mxu0 %v1406_v9 }
  0x1a   :  { %v1389_v11 = vld [vmem:[%s3034_s3 + $0x20] sm:$0xf]  ;;  %v1925_v3 = vld [vmem:[%s3034_s3 + $0x12c] sm:$0xf0]  ;;  %v1790_v15 = vor.u32 %v1993_v8, %v1789_v7  ;;  %915 = vmatpush.bf16.msra.mxu1 %v1534_v10 }
  0x1b   :  { %v1517_v14 = vld [vmem:[%s3034_s3 + $0x120] sm:$0xf]  ;;  %v1957_v17 = vld [vmem:[%s3034_s3 + $0x22c] sm:$0xf0]  ;;  %v1390_v21 = vor.u32 %v1893_v13, %v1389_v11  ;;  %928 = vmatpush.bf16.msra.mxu2 %v1662_v12 }
  0x1c   :  { %v1645_v16 = vld [vmem:[%s3034_s3 + $0x220] sm:$0xf]  ;;  %v1989_v19 = vld [vmem:[%s3034_s3 + $0x32c] sm:$0xf0]  ;;  %v1518_v22 = vor.u32 %v1925_v3, %v1517_v14  ;;  %941 = vmatpush.bf16.msra.mxu3 %v1790_v15 }
  0x1d   :  { %v1773_v18 = vld [vmem:[%s3034_s3 + $0x320] sm:$0xf]  ;;  %v1889_v23 = vld [vmem:[%s3034_s3 + $0xc] sm:$0xf0]  ;;  %v1646_v26 = vor.u32 %v1957_v17, %v1645_v16  ;;  %903 = vmatpush.bf16.msra.mxu0 %v1390_v21 }
  0x1e   :  { %v1373_v20 = vld [vmem:[%s3034_s3] sm:$0xf]  ;;  %v1921_v25 = vld [vmem:[%s3034_s3 + $0x10c] sm:$0xf0]  ;;  %v1774_v30 = vor.u32 %v1989_v19, %v1773_v18  ;;  %916 = vmatpush.bf16.msra.mxu1 %v1518_v22 }
  0x1f   :  { %v1501_v24 = vld [vmem:[%s3034_s3 + $0x100] sm:$0xf]  ;;  %v1953_v28 = vld [vmem:[%s3034_s3 + $0x20c] sm:$0xf0]  ;;  %v1374_v37 = vor.u32 %v1889_v23, %v1373_v20  ;;  %929 = vmatpush.bf16.msra.mxu2 %v1646_v26 }
  0x20   :  { %v1629_v27 = vld [vmem:[%s3034_s3 + $0x200] sm:$0xf]  ;;  %v1985_v31 = vld [vmem:[%s3034_s3 + $0x30c] sm:$0xf0]  ;;  %v1502_v38 = vor.u32 %v1921_v25, %v1501_v24  ;;  %942 = vmatpush.bf16.msra.mxu3 %v1774_v30 }
  0x21   :  { %v1757_v29 = vld [vmem:[%s3034_s3 + $0x300] sm:$0xf]  ;;  %v1630_v42 = vor.u32 %v1953_v28, %v1629_v27 }
  0x22   :  { %v1758_v44 = vor.u32 %v1985_v31, %v1757_v29 }
  0x23   :  { %12 = vsyncpa [#allocation3], 0  ;;  %v1746_v48 = vor.u32 %v1979_v36, %v1743_v39  ;;  %v1874_v49 = vor.u32 %v2011_v40, %v1871_v41  ;;  %v1943_v50 = vld [vmem:[%s3034_s3 + $0x1c4] sm:$0xf]  ;;  %v1599_v51 = vld [vmem:[%s3034_s3 + $0x1d0] sm:$0xf0]  ;;  %904 = vmatpush.bf16.msra.mxu0 %v1374_v37  ;;  %917 = vmatpush.bf16.msra.mxu1 %v1502_v38  ;;  %v1474_v56 = vor.u32 %v1911_v46, %v1471_v47 }
  0x24   :  { %v1975_v52 = vld [vmem:[%s3034_s3 + $0x2c4] sm:$0xf]  ;;  %v1727_v53 = vld [vmem:[%s3034_s3 + $0x2d0] sm:$0xf0]  ;;  %930 = vmatpush.bf16.msra.mxu2 %v1630_v42  ;;  %943 = vmatpush.bf16.msra.mxu3 %v1758_v44  ;;  %v1602_v57 = vor.u32 %v1943_v50, %v1599_v51  ;;  %s1362_s24 = sshll.u32 %s3038_s7, 4  ;;  %s1363_s24 = int_to_ptr.hbm [resolvable:$true] %s1362_s24 }
  0x25   :  { %v2007_v54 = vld [vmem:[%s3034_s3 + $0x3c4] sm:$0xf]  ;;  %v1855_v55 = vld [vmem:[%s3034_s3 + $0x3d0] sm:$0xf0]  ;;  %v1730_v60 = vor.u32 %v1975_v52, %v1727_v53 }
  0x26   :  { %v1907_v58 = vld [vmem:[%s3034_s3 + $0xa4] sm:$0xf]  ;;  %v1455_v59 = vld [vmem:[%s3034_s3 + $0xb0] sm:$0xf0]  ;;  %v1858_v61 = vor.u32 %v2007_v54, %v1855_v55 }
  0x27   :  { %949 = vmatpush.bf16.msrb.mxu0 %v1490_v43  ;;  %962 = vmatpush.bf16.msrb.mxu1 %v1618_v45  ;;  %v1939_v62 = vld [vmem:[%s3034_s3 + $0x1a4] sm:$0xf]  ;;  %v1583_v63 = vld [vmem:[%s3034_s3 + $0x1b0] sm:$0xf0]  ;;  %v1458_v5 = vor.u32 %v1907_v58, %v1455_v59 }
  0x28   :  { %975 = vmatpush.bf16.msrb.mxu2 %v1746_v48  ;;  %988 = vmatpush.bf16.msrb.mxu3 %v1874_v49  ;;  %v1971_v0 = vld [vmem:[%s3034_s3 + $0x2a4] sm:$0xf]  ;;  %v1711_v1 = vld [vmem:[%s3034_s3 + $0x2b0] sm:$0xf0]  ;;  %v1586_v6 = vor.u32 %v1939_v62, %v1583_v63 }
  0x29   :  { %v2003_v2 = vld [vmem:[%s3034_s3 + $0x3a4] sm:$0xf]  ;;  %v1839_v4 = vld [vmem:[%s3034_s3 + $0x3b0] sm:$0xf0]  ;;  %v1714_v7 = vor.u32 %v1971_v0, %v1711_v1 }
  0x2a   :  { %v1842_v8 = vor.u32 %v2003_v2, %v1839_v4  ;;  %v1903_v9 = vld [vmem:[%s3034_s3 + $0x84] sm:$0xf]  ;;  %v1439_v10 = vld [vmem:[%s3034_s3 + $0x90] sm:$0xf0] }
  0x2b   :  { %950 = vmatpush.bf16.msrb.mxu0 %v1474_v56  ;;  %963 = vmatpush.bf16.msrb.mxu1 %v1602_v57  ;;  %v1935_v11 = vld [vmem:[%s3034_s3 + $0x184] sm:$0xf]  ;;  %v1442_v12 = vor.u32 %v1903_v9, %v1439_v10  ;;  %v1567_v13 = vld [vmem:[%s3034_s3 + $0x190] sm:$0xf0] }
  0x2c   :  { %976 = vmatpush.bf16.msrb.mxu2 %v1730_v60  ;;  %989 = vmatpush.bf16.msrb.mxu3 %v1858_v61  ;;  %v1967_v14 = vld [vmem:[%s3034_s3 + $0x284] sm:$0xf]  ;;  %v1695_v3 = vld [vmem:[%s3034_s3 + $0x290] sm:$0xf0]  ;;  %v1570_v15 = vor.u32 %v1935_v11, %v1567_v13 }
  0x2d   :  { %v1698_v16 = vor.u32 %v1967_v14, %v1695_v3  ;;  %v1999_v17 = vld [vmem:[%s3034_s3 + $0x384] sm:$0xf]  ;;  %v1823_v18 = vld [vmem:[%s3034_s3 + $0x390] sm:$0xf0] }
  0x2e   :  { %v1826_v19 = vor.u32 %v1999_v17, %v1823_v18  ;;  %v1899_v20 = vld [vmem:[%s3034_s3 + $0x64] sm:$0xf]  ;;  %v1423_v21 = vld [vmem:[%s3034_s3 + $0x70] sm:$0xf0] }
  0x2f   :  { %951 = vmatpush.bf16.msrb.mxu0 %v1458_v5  ;;  %964 = vmatpush.bf16.msrb.mxu1 %v1586_v6  ;;  %v1931_v22 = vld [vmem:[%s3034_s3 + $0x164] sm:$0xf]  ;;  %v1426_v23 = vor.u32 %v1899_v20, %v1423_v21  ;;  %v1551_v24 = vld [vmem:[%s3034_s3 + $0x170] sm:$0xf0]  ;;  %v29_v6 = vld [vmem:[%s3032_s1 + $0x8] sm:$0x77] }
  0x30   :  { %977 = vmatpush.bf16.msrb.mxu2 %v1714_v7  ;;  %990 = vmatpush.bf16.msrb.mxu3 %v1842_v8  ;;  %v1963_v25 = vld [vmem:[%s3034_s3 + $0x264] sm:$0xf]  ;;  %v1679_v26 = vld [vmem:[%s3034_s3 + $0x270] sm:$0xf0]  ;;  %v1554_v27 = vor.u32 %v1931_v22, %v1551_v24  ;;  %v40_v9 = vperm.slane %v29_v6, 0  ;;  %v41_v10 = vperm.slane %v29_v6, 4 }
  0x31   :  { %v1682_v28 = vor.u32 %v1963_v25, %v1679_v26  ;;  %v1995_v29 = vld [vmem:[%s3034_s3 + $0x364] sm:$0xf]  ;;  %v1807_v30 = vld [vmem:[%s3034_s3 + $0x370] sm:$0xf0]  ;;  %v97_v3 = vperm.slane %v29_v6, 2  ;;  %v73_v22 = vperm.slane %v29_v6, 1 }
  0x32   :  { %v1895_v31 = vld [vmem:[%s3034_s3 + $0x44] sm:$0xf]  ;;  %v1810_v32 = vor.u32 %v1995_v29, %v1807_v30  ;;  %v1407_v33 = vld [vmem:[%s3034_s3 + $0x50] sm:$0xf0]  ;;  %v48_v18 = vperm.slane %v40_v9, 0 }
  0x33   :  { %952 = vmatpush.bf16.msrb.mxu0 %v1442_v12  ;;  %965 = vmatpush.bf16.msrb.mxu1 %v1570_v15  ;;  %v1927_v34 = vld [vmem:[%s3034_s3 + $0x144] sm:$0xf]  ;;  %v1535_v35 = vld [vmem:[%s3034_s3 + $0x150] sm:$0xf0]  ;;  %v1410_v36 = vor.u32 %v1895_v31, %v1407_v33  ;;  %v30_v12 = vld [vmem:[%s3033_s2] sm:$0xf] }
  0x34   :  { %978 = vmatpush.bf16.msrb.mxu2 %v1698_v16  ;;  %991 = vmatpush.bf16.msrb.mxu3 %v1826_v19  ;;  %v1959_v37 = vld [vmem:[%s3034_s3 + $0x244] sm:$0xf]  ;;  %v1663_v38 = vld [vmem:[%s3034_s3 + $0x250] sm:$0xf0]  ;;  %v1538_v40 = vor.u32 %v1927_v34, %v1535_v35  ;;  %v98_v15 = vperm.slane %v29_v6, 6  ;;  %v49_v19 = vperm.slane %v41_v10, 0 }
  0x35   :  { %v1991_v39 = vld [vmem:[%s3034_s3 + $0x344] sm:$0xf]  ;;  %v1666_v41 = vor.u32 %v1959_v37, %v1663_v38  ;;  %v1791_v42 = vld [vmem:[%s3034_s3 + $0x350] sm:$0xf0]  ;;  %v55_v24 = vperm.slane %v30_v12, 0  ;;  %v56_v25 = vperm.slane %v30_v12, 1 }
  0x36   :  { %v1794_v43 = vor.u32 %v1991_v39, %v1791_v42  ;;  %v1891_v44 = vld [vmem:[%s3034_s3 + $0x24] sm:$0xf]  ;;  %v1391_v45 = vld [vmem:[%s3034_s3 + $0x30] sm:$0xf0]  ;;  %v57_v26 = vperm.slane %v30_v12, 2  ;;  %v105_v30 = vperm.slane %v97_v3, 2 }
  0x37   :  { %953 = vmatpush.bf16.msrb.mxu0 %v1426_v23  ;;  %966 = vmatpush.bf16.msrb.mxu1 %v1554_v27  ;;  %v1923_v46 = vld [vmem:[%s3034_s3 + $0x124] sm:$0xf]  ;;  %v1394_v47 = vor.u32 %v1891_v44, %v1391_v45  ;;  %v1519_v48 = vld [vmem:[%s3034_s3 + $0x130] sm:$0xf0]  ;;  %v74_v23 = vperm.slane %v29_v6, 5  ;;  %v58_v27 = vperm.slane %v30_v12, 3 }
  0x38   :  { %979 = vmatpush.bf16.msrb.mxu2 %v1682_v28  ;;  %992 = vmatpush.bf16.msrb.mxu3 %v1810_v32  ;;  %v1955_v49 = vld [vmem:[%s3034_s3 + $0x224] sm:$0xf]  ;;  %v1647_v50 = vld [vmem:[%s3034_s3 + $0x230] sm:$0xf0]  ;;  %v1522_v51 = vor.u32 %v1923_v46, %v1519_v48  ;;  %v106_v31 = vperm.slane %v98_v15, 2  ;;  %v81_v39 = vperm.slane %v73_v22, 1 }
  0x39   :  { %v1650_v52 = vor.u32 %v1955_v49, %v1647_v50  ;;  %v1987_v53 = vld [vmem:[%s3034_s3 + $0x324] sm:$0xf]  ;;  %v1775_v54 = vld [vmem:[%s3034_s3 + $0x330] sm:$0xf0]  ;;  %v2014_v6 = vld [vmem:[%s3034_s3 + $0x3f4] sm:$0xf0] }
  0x3a   :  { %v1778_v55 = vor.u32 %v1987_v53, %v1775_v54  ;;  %v1887_v56 = vld [vmem:[%s3034_s3 + $0x4] sm:$0xf]  ;;  %v1375_v57 = vld [vmem:[%s3034_s3 + $0x10] sm:$0xf0]  ;;  %v1493_v54 = vld [vmem:[%s3034_s3 + $0xe8] sm:$0xf] }
  0x3b   :  { %954 = vmatpush.bf16.msrb.mxu0 %v1410_v36  ;;  %967 = vmatpush.bf16.msrb.mxu1 %v1538_v40  ;;  %v1919_v58 = vld [vmem:[%s3034_s3 + $0x104] sm:$0xf]  ;;  %v1378_v59 = vor.u32 %v1887_v56, %v1375_v57  ;;  %v1503_v60 = vld [vmem:[%s3034_s3 + $0x110] sm:$0xf0]  ;;  %v82_v40 = vperm.slane %v74_v23, 1 }
  0x3c   :  { %980 = vmatpush.bf16.msrb.mxu2 %v1666_v41  ;;  %993 = vmatpush.bf16.msrb.mxu3 %v1794_v43  ;;  %v1951_v61 = vld [vmem:[%s3034_s3 + $0x204] sm:$0xf]  ;;  %v1631_v62 = vld [vmem:[%s3034_s3 + $0x210] sm:$0xf0]  ;;  %v1506_v63 = vor.u32 %v1919_v58, %v1503_v60  ;;  %v1621_v60 = vld [vmem:[%s3034_s3 + $0x1e8] sm:$0xf] }
  0x3d   :  { %v1634_v0 = vor.u32 %v1951_v61, %v1631_v62  ;;  %v1983_v1 = vld [vmem:[%s3034_s3 + $0x304] sm:$0xf]  ;;  %v1759_v2 = vld [vmem:[%s3034_s3 + $0x310] sm:$0xf0]  ;;  %v1950_v61 = vld [vmem:[%s3034_s3 + $0x1f4] sm:$0xf0] }
  0x3e   :  { %v1762_v4 = vor.u32 %v1983_v1, %v1759_v2  ;;  %v28_v5 = vld [vmem:[%s3032_s1] sm:$0x77]  ;;  %v1749_v62 = vld [vmem:[%s3034_s3 + $0x2e8] sm:$0xf] }
  0x3f   :  { %955 = vmatpush.bf16.msrb.mxu0 %v1394_v47  ;;  %968 = vmatpush.bf16.msrb.mxu1 %v1522_v51  ;;  %v38_v7 = vperm.slane %v28_v5, 0  ;;  %v39_v8 = vperm.slane %v28_v5, 4  ;;  %v95_v13 = vperm.slane %v28_v5, 2  ;;  %v96_v14 = vperm.slane %v28_v5, 6 }
  0x40   :  { %981 = vmatpush.bf16.msrb.mxu2 %v1650_v52  ;;  %994 = vmatpush.bf16.msrb.mxu3 %v1778_v55  ;;  %v71_v20 = vperm.slane %v28_v5, 1  ;;  %v72_v21 = vperm.slane %v28_v5, 5  ;;  %v1877_v5 = vld [vmem:[%s3034_s3 + $0x3e8] sm:$0xf] }
  0x41   :  { %v46_v16 = vperm.slane %v38_v7, 0  ;;  %v47_v17 = vperm.slane %v39_v8, 0  ;;  %v103_v28 = vperm.slane %v95_v13, 2  ;;  %v104_v29 = vperm.slane %v96_v14, 2  ;;  %v1477_v13 = vld [vmem:[%s3034_s3 + $0xc8] sm:$0xf] }
  0x42   :  { %v79_v37 = vperm.slane %v71_v20, 1  ;;  %v80_v38 = vperm.slane %v72_v21, 1  ;;  %v1622_v8 = vor.u32 %v1950_v61, %v1621_v60  ;;  %v1914_v14 = vld [vmem:[%s3034_s3 + $0xd4] sm:$0xf0]  ;;  %v1878_v15 = vor.u32 %v2014_v6, %v1877_v5  ;;  %v1861_v20 = vld [vmem:[%s3034_s3 + $0x3c8] sm:$0xf] }
  0x43   :  { %956 = vmatpush.bf16.msrb.mxu0 %v1378_v59  ;;  %969 = vmatpush.bf16.msrb.mxu1 %v1506_v63  ;;  %v1918_v59 = vld [vmem:[%s3034_s3 + $0xf4] sm:$0xf0]  ;;  %v1478_v22 = vor.u32 %v1914_v14, %v1477_v13  ;;  %v1413_v60 = vld [vmem:[%s3034_s3 + $0x48] sm:$0xf] }
  0x44   :  { %982 = vmatpush.bf16.msrb.mxu2 %v1634_v0  ;;  %995 = vmatpush.bf16.msrb.mxu3 %v1762_v4  ;;  %v1982_v4 = vld [vmem:[%s3034_s3 + $0x2f4] sm:$0xf0]  ;;  %v1494_v7 = vor.u32 %v1918_v59, %v1493_v54  ;;  %v1685_v54 = vld [vmem:[%s3034_s3 + $0x268] sm:$0xf] }
  0x45   :  { %v1750_v3 = vor.u32 %v1982_v4, %v1749_v62  ;;  %v2010_v21 = vld [vmem:[%s3034_s3 + $0x3d4] sm:$0xf0]  ;;  %v1797_v5 = vld [vmem:[%s3034_s3 + $0x348] sm:$0xf] }
  0x46   :  { %v1898_v61 = vld [vmem:[%s3034_s3 + $0x54] sm:$0xf0]  ;;  %v1397_v13 = vld [vmem:[%s3034_s3 + $0x28] sm:$0xf] }
  0x47   :  { %v1962_v4 = vld [vmem:[%s3034_s3 + $0x254] sm:$0xf0] }
  0x48   :  { %v1994_v6 = vld [vmem:[%s3034_s3 + $0x354] sm:$0xf0] }
  0x49   :  { %v1894_v14 = vld [vmem:[%s3034_s3 + $0x34] sm:$0xf0] }
  0x74   :  { %v34_v11 = vpop.permute.xlu0 %33  ;;  %v93_v36 = vpop.permute.xlu1 %92 }
  0x75   :  { %v50_v32 = vmul.f32 %v46_v16, %v34_v11  ;;  %v51_v33 = vmul.f32 %v47_v17, %v34_v11  ;;  %v52_v34 = vmul.f32 %v48_v18, %v34_v11  ;;  %v53_v35 = vmul.f32 %v49_v19, %v34_v11  ;;  %v1605_v16 = vld [vmem:[%s3034_s3 + $0x1c8] sm:$0xf]  ;;  %v1946_v17 = vld [vmem:[%s3034_s3 + $0x1d4] sm:$0xf0] }
  0x76   :  { %v107_v41 = vmul.f32 %v103_v28, %v93_v36  ;;  %v108_v42 = vmul.f32 %v104_v29, %v93_v36  ;;  %v109_v43 = vmul.f32 %v105_v30, %v93_v36  ;;  %v110_v44 = vmul.f32 %v106_v31, %v93_v36  ;;  %v1733_v18 = vld [vmem:[%s3034_s3 + $0x2c8] sm:$0xf]  ;;  %v1978_v19 = vld [vmem:[%s3034_s3 + $0x2d4] sm:$0xf0] }
  0x77   :  { %v63_v45 = vadd.f32 %v55_v24, %v50_v32  ;;  %v64_v46 = vadd.f32 %v56_v25, %v51_v33  ;;  %v65_v47 = vadd.f32 %v57_v26, %v52_v34  ;;  %v66_v48 = vadd.f32 %v58_v27, %v53_v35  ;;  %v1461_v24 = vld [vmem:[%s3034_s3 + $0xa8] sm:$0xf]  ;;  %v1910_v25 = vld [vmem:[%s3034_s3 + $0xb4] sm:$0xf0] }
  0x78   :  { %v1606_v23 = vor.u32 %v1946_v17, %v1605_v16  ;;  %v1734_v26 = vor.u32 %v1978_v19, %v1733_v18  ;;  %v1862_v27 = vor.u32 %v2010_v21, %v1861_v20  ;;  %v1589_v28 = vld [vmem:[%s3034_s3 + $0x1a8] sm:$0xf]  ;;  %v1942_v29 = vld [vmem:[%s3034_s3 + $0x1b4] sm:$0xf0]  ;;  %v1462_v34 = vor.u32 %v1910_v25, %v1461_v24 }
  0x79   :  { %v1717_v30 = vld [vmem:[%s3034_s3 + $0x2a8] sm:$0xf]  ;;  %v1974_v31 = vld [vmem:[%s3034_s3 + $0x2b4] sm:$0xf0]  ;;  %v1590_v35 = vor.u32 %v1942_v29, %v1589_v28 }
  0x7a   :  { %v1845_v32 = vld [vmem:[%s3034_s3 + $0x3a8] sm:$0xf]  ;;  %v2006_v33 = vld [vmem:[%s3034_s3 + $0x3b4] sm:$0xf0] }
  0x7b   :  { %v1445_v36 = vld [vmem:[%s3034_s3 + $0x88] sm:$0xf]  ;;  %v1926_v17 = vld [vmem:[%s3034_s3 + $0x134] sm:$0xf0] }
  0x7c   :  { %v1525_v16 = vld [vmem:[%s3034_s3 + $0x128] sm:$0xf]  ;;  %v1958_v19 = vld [vmem:[%s3034_s3 + $0x234] sm:$0xf0] }
  0x7d   :  { %v69_v49 = vpop.permute.xlu0 %68  ;;  %v1653_v18 = vld [vmem:[%s3034_s3 + $0x228] sm:$0xf]  ;;  %v1990_v21 = vld [vmem:[%s3034_s3 + $0x334] sm:$0xf0]  ;;  %v1526_v24 = vor.u32 %v1926_v17, %v1525_v16  ;;  %v1936_v16 = vld [vmem:[%s3034_s3 + $0x18c] sm:$0xf] }
  0x7e   :  { %v83_v50 = vmul.f32 %v79_v37, %v69_v49  ;;  %v84_v51 = vmul.f32 %v80_v38, %v69_v49  ;;  %v85_v52 = vmul.f32 %v81_v39, %v69_v49  ;;  %v86_v53 = vmul.f32 %v82_v40, %v69_v49  ;;  %v1906_v37 = vld [vmem:[%s3034_s3 + $0x94] sm:$0xf0]  ;;  %v1573_v40 = vld [vmem:[%s3034_s3 + $0x188] sm:$0xf]  ;;  %v1575_v17 = vld [vmem:[%s3034_s3 + $0x198] sm:$0xf0] }
  0x7f   :  { %v1718_v38 = vor.u32 %v1974_v31, %v1717_v30  ;;  %v1846_v39 = vor.u32 %v2006_v33, %v1845_v32  ;;  %v1902_v49 = vld [vmem:[%s3034_s3 + $0x74] sm:$0xf0]  ;;  %v1781_v20 = vld [vmem:[%s3034_s3 + $0x328] sm:$0xf]  ;;  %v1654_v28 = vor.u32 %v1958_v19, %v1653_v18  ;;  %v1968_v18 = vld [vmem:[%s3034_s3 + $0x28c] sm:$0xf] }
  0x80   :  { %v87_v55 = vadd.f32 %v83_v50, %v63_v45  ;;  %v88_v56 = vadd.f32 %v84_v51, %v64_v46  ;;  %v89_v57 = vadd.f32 %v85_v52, %v65_v47  ;;  %v90_v58 = vadd.f32 %v86_v53, %v66_v48  ;;  %v2002_v45 = vld [vmem:[%s3034_s3 + $0x394] sm:$0xf0]  ;;  %v1429_v48 = vld [vmem:[%s3034_s3 + $0x68] sm:$0xf]  ;;  %v1703_v19 = vld [vmem:[%s3034_s3 + $0x298] sm:$0xf0] }
  0x81   :  { %v1446_v46 = vor.u32 %v1906_v37, %v1445_v36  ;;  %v1557_v52 = vld [vmem:[%s3034_s3 + $0x168] sm:$0xf]  ;;  %v1934_v53 = vld [vmem:[%s3034_s3 + $0x174] sm:$0xf0]  ;;  %v1782_v29 = vor.u32 %v1990_v21, %v1781_v20  ;;  %v1948_v36 = vld [vmem:[%s3034_s3 + $0x1ec] sm:$0xf] }
  0x82   :  { %v111_v63 = vadd.f32 %v107_v41, %v87_v55  ;;  %v112_v0 = vadd.f32 %v108_v42, %v88_v56  ;;  %v113_v1 = vadd.f32 %v109_v43, %v89_v57  ;;  %v114_v2 = vadd.f32 %v110_v44, %v90_v58  ;;  %v1938_v41 = vld [vmem:[%s3034_s3 + $0x194] sm:$0xf0]  ;;  %v1701_v42 = vld [vmem:[%s3034_s3 + $0x288] sm:$0xf]  ;;  %v1623_v37 = vld [vmem:[%s3034_s3 + $0x1f8] sm:$0xf0] }
  0x83   :  { %v1970_v43 = vld [vmem:[%s3034_s3 + $0x294] sm:$0xf0]  ;;  %v1829_v44 = vld [vmem:[%s3034_s3 + $0x388] sm:$0xf]  ;;  %v1574_v47 = vor.u32 %v1938_v41, %v1573_v40  ;;  %v1430_v58 = vor.u32 %v1902_v49, %v1429_v48  ;;  %v1558_v59 = vor.u32 %v1934_v53, %v1557_v52  ;;  %v1751_v41 = vld [vmem:[%s3034_s3 + $0x2f8] sm:$0xf0] }
  0x84   :  { %v2529_v9 = vpack.c.bf16 %v111_v63, %v111_v63  ;;  %v2531_v10 = vpack.c.bf16 %v112_v0, %v112_v0  ;;  %v2533_v11 = vpack.c.bf16 %v113_v1, %v113_v1  ;;  %v2535_v12 = vpack.c.bf16 %v114_v2, %v114_v2  ;;  %v1966_v55 = vld [vmem:[%s3034_s3 + $0x274] sm:$0xf0]  ;;  %v1813_v56 = vld [vmem:[%s3034_s3 + $0x368] sm:$0xf]  ;;  %v1912_v48 = vld [vmem:[%s3034_s3 + $0xcc] sm:$0xf] }
  0x85   :  { %v1702_v50 = vor.u32 %v1970_v43, %v1701_v42  ;;  %v1830_v51 = vor.u32 %v2002_v45, %v1829_v44  ;;  %v1998_v57 = vld [vmem:[%s3034_s3 + $0x374] sm:$0xf0]  ;;  %v1686_v62 = vor.u32 %v1966_v55, %v1685_v54  ;;  %v1541_v0 = vld [vmem:[%s3034_s3 + $0x148] sm:$0xf]  ;;  %v2012_v42 = vld [vmem:[%s3034_s3 + $0x3ec] sm:$0xf] }
  0x86   :  { %905 = vmatmul.bf16.vlgmr.msra.gmra.mxu0 %v2529_v9  ;;  %918 = vmatmul.bf16.vlgmr.msra.gmra.mxu1 %v2531_v10  ;;  %v1814_v63 = vor.u32 %v1998_v57, %v1813_v56  ;;  %v1930_v1 = vld [vmem:[%s3034_s3 + $0x154] sm:$0xf0]  ;;  %v1669_v2 = vld [vmem:[%s3034_s3 + $0x248] sm:$0xf]  ;;  %v1879_v43 = vld [vmem:[%s3034_s3 + $0x3f8] sm:$0xf0] }
  0x87   :  { %931 = vmatmul.bf16.vlgmr.msra.gmra.mxu2 %v2533_v11  ;;  %944 = vmatmul.bf16.vlgmr.msra.gmra.mxu3 %v2535_v12  ;;  %v1890_v25 = vld [vmem:[%s3034_s3 + $0x14] sm:$0xf0]  ;;  %v1637_v30 = vld [vmem:[%s3034_s3 + $0x208] sm:$0xf]  ;;  %v1479_v49 = vld [vmem:[%s3034_s3 + $0xd8] sm:$0xf0] }
  0x88   :  { %1001 = vmatpush.bf16.msra.mxu0 %v1494_v7  ;;  %1014 = vmatpush.bf16.msra.mxu1 %v1622_v8  ;;  %v1414_v7 = vor.u32 %v1898_v61, %v1413_v60  ;;  %v1542_v8 = vor.u32 %v1930_v1, %v1541_v0  ;;  %v1954_v31 = vld [vmem:[%s3034_s3 + $0x214] sm:$0xf0]  ;;  %v1765_v32 = vld [vmem:[%s3034_s3 + $0x308] sm:$0xf]  ;;  %v1944_v52 = vld [vmem:[%s3034_s3 + $0x1cc] sm:$0xf] }
  0x89   :  { %1027 = vmatpush.bf16.msra.mxu2 %v1750_v3  ;;  %1040 = vmatpush.bf16.msra.mxu3 %v1878_v15  ;;  %v1670_v3 = vor.u32 %v1962_v4, %v1669_v2  ;;  %v1798_v15 = vor.u32 %v1994_v6, %v1797_v5  ;;  %v1986_v33 = vld [vmem:[%s3034_s3 + $0x314] sm:$0xf0]  ;;  %v1638_v44 = vor.u32 %v1954_v31, %v1637_v30  ;;  %v1607_v53 = vld [vmem:[%s3034_s3 + $0x1d8] sm:$0xf0]  ;;  %v1976_v54 = vld [vmem:[%s3034_s3 + $0x2cc] sm:$0xf] }
  0x8a   :  { %v1766_v45 = vor.u32 %v1986_v33, %v1765_v32  ;;  %v1735_v55 = vld [vmem:[%s3034_s3 + $0x2d8] sm:$0xf0]  ;;  %v2008_v56 = vld [vmem:[%s3034_s3 + $0x3cc] sm:$0xf] }
  0x8b   :  { %v1863_v57 = vld [vmem:[%s3034_s3 + $0x3d8] sm:$0xf0]  ;;  %v1908_v60 = vld [vmem:[%s3034_s3 + $0xac] sm:$0xf] }
  0x8c   :  { %1002 = vmatpush.bf16.msra.mxu0 %v1478_v22  ;;  %1015 = vmatpush.bf16.msra.mxu1 %v1606_v23  ;;  %v1381_v22 = vld [vmem:[%s3034_s3 + $0x8] sm:$0xf]  ;;  %v1398_v23 = vor.u32 %v1894_v14, %v1397_v13  ;;  %v1463_v61 = vld [vmem:[%s3034_s3 + $0xb8] sm:$0xf0]  ;;  %v1940_v0 = vld [vmem:[%s3034_s3 + $0x1ac] sm:$0xf] }
  0x8d   :  { %1028 = vmatpush.bf16.msra.mxu2 %v1734_v26  ;;  %1041 = vmatpush.bf16.msra.mxu3 %v1862_v27  ;;  %v1509_v26 = vld [vmem:[%s3034_s3 + $0x108] sm:$0xf]  ;;  %v1922_v27 = vld [vmem:[%s3034_s3 + $0x114] sm:$0xf0]  ;;  %v1591_v1 = vld [vmem:[%s3034_s3 + $0x1b8] sm:$0xf0] }
  0x8e   :  { %v1510_v40 = vor.u32 %v1922_v27, %v1509_v26  ;;  %v1972_v2 = vld [vmem:[%s3034_s3 + $0x2ac] sm:$0xf]  ;;  %v1719_v4 = vld [vmem:[%s3034_s3 + $0x2b8] sm:$0xf0]  ;;  %v1706_v26 = vor.u32 %v1968_v18, %v1703_v19 }
  0x8f   :  { %v2004_v5 = vld [vmem:[%s3034_s3 + $0x3ac] sm:$0xf]  ;;  %v1847_v6 = vld [vmem:[%s3034_s3 + $0x3b8] sm:$0xf0] }
  0x90   :  { %1003 = vmatpush.bf16.msra.mxu0 %v1462_v34  ;;  %1016 = vmatpush.bf16.msra.mxu1 %v1590_v35  ;;  %v1916_v34 = vld [vmem:[%s3034_s3 + $0xec] sm:$0xf]  ;;  %v1495_v35 = vld [vmem:[%s3034_s3 + $0xf8] sm:$0xf0] }
  0x91   :  { %1029 = vmatpush.bf16.msra.mxu2 %v1718_v38  ;;  %1042 = vmatpush.bf16.msra.mxu3 %v1846_v39  ;;  %v1980_v38 = vld [vmem:[%s3034_s3 + $0x2ec] sm:$0xf]  ;;  %v1382_v39 = vor.u32 %v1890_v25, %v1381_v22  ;;  %v1447_v14 = vld [vmem:[%s3034_s3 + $0x98] sm:$0xf0] }
  0x92   :  { %v1904_v13 = vld [vmem:[%s3034_s3 + $0x8c] sm:$0xf]  ;;  %v1831_v21 = vld [vmem:[%s3034_s3 + $0x398] sm:$0xf0] }
  0x93   :  { %v2000_v20 = vld [vmem:[%s3034_s3 + $0x38c] sm:$0xf]  ;;  %v1450_v22 = vor.u32 %v1904_v13, %v1447_v14  ;;  %v1431_v25 = vld [vmem:[%s3034_s3 + $0x78] sm:$0xf0] }
  0x94   :  { %1004 = vmatpush.bf16.msra.mxu0 %v1446_v46  ;;  %1017 = vmatpush.bf16.msra.mxu1 %v1574_v47  ;;  %v1498_v46 = vor.u32 %v1916_v34, %v1495_v35  ;;  %v1626_v47 = vor.u32 %v1948_v36, %v1623_v37  ;;  %v1834_v27 = vor.u32 %v2000_v20, %v1831_v21  ;;  %v1964_v30 = vld [vmem:[%s3034_s3 + $0x26c] sm:$0xf]  ;;  %v1687_v31 = vld [vmem:[%s3034_s3 + $0x278] sm:$0xf0] }
  0x95   :  { %1030 = vmatpush.bf16.msra.mxu2 %v1702_v50  ;;  %1043 = vmatpush.bf16.msra.mxu3 %v1830_v51  ;;  %v1754_v50 = vor.u32 %v1980_v38, %v1751_v41  ;;  %v1882_v51 = vor.u32 %v2012_v42, %v1879_v43  ;;  %v1996_v32 = vld [vmem:[%s3034_s3 + $0x36c] sm:$0xf]  ;;  %v1815_v33 = vld [vmem:[%s3034_s3 + $0x378] sm:$0xf0]  ;;  %v1690_v38 = vor.u32 %v1964_v30, %v1687_v31 }
  0x96   :  { %957 = vmatmul.bf16.vlgmr.msrb.gmra.mxu0 %v2529_v9  ;;  %970 = vmatmul.bf16.vlgmr.msrb.gmra.mxu1 %v2531_v10  ;;  %v1896_v36 = vld [vmem:[%s3034_s3 + $0x4c] sm:$0xf]  ;;  %v1415_v37 = vld [vmem:[%s3034_s3 + $0x58] sm:$0xf0] }
  0x97   :  { %983 = vmatmul.bf16.vlgmr.msrb.gmra.mxu2 %v2533_v11  ;;  %996 = vmatmul.bf16.vlgmr.msrb.gmra.mxu3 %v2535_v12  ;;  %v1543_v41 = vld [vmem:[%s3034_s3 + $0x158] sm:$0xf0]  ;;  %v1960_v42 = vld [vmem:[%s3034_s3 + $0x24c] sm:$0xf] }
  0x98   :  { %1005 = vmatpush.bf16.msra.mxu0 %v1430_v58  ;;  %1018 = vmatpush.bf16.msra.mxu1 %v1558_v59  ;;  %v1482_v58 = vor.u32 %v1912_v48, %v1479_v49  ;;  %v1610_v59 = vor.u32 %v1944_v52, %v1607_v53  ;;  %v1671_v43 = vld [vmem:[%s3034_s3 + $0x258] sm:$0xf0]  ;;  %v1892_v48 = vld [vmem:[%s3034_s3 + $0x2c] sm:$0xf] }
  0x99   :  { %1031 = vmatpush.bf16.msra.mxu2 %v1686_v62  ;;  %1044 = vmatpush.bf16.msra.mxu3 %v1814_v63  ;;  %v1738_v62 = vor.u32 %v1976_v54, %v1735_v55  ;;  %v1866_v63 = vor.u32 %v2008_v56, %v1863_v57  ;;  %v1399_v49 = vld [vmem:[%s3034_s3 + $0x38] sm:$0xf0]  ;;  %v1924_v52 = vld [vmem:[%s3034_s3 + $0x12c] sm:$0xf] }
  0x9a   :  { %v1527_v53 = vld [vmem:[%s3034_s3 + $0x138] sm:$0xf0]  ;;  %v1956_v54 = vld [vmem:[%s3034_s3 + $0x22c] sm:$0xf] }
  0x9b   :  { %v1655_v55 = vld [vmem:[%s3034_s3 + $0x238] sm:$0xf0]  ;;  %v1988_v56 = vld [vmem:[%s3034_s3 + $0x32c] sm:$0xf] }
  0x9c   :  { %1006 = vmatpush.bf16.msra.mxu0 %v1414_v7  ;;  %1019 = vmatpush.bf16.msra.mxu1 %v1542_v8  ;;  %v1466_v7 = vor.u32 %v1908_v60, %v1463_v61  ;;  %v1594_v8 = vor.u32 %v1940_v0, %v1591_v1  ;;  %v1783_v57 = vld [vmem:[%s3034_s3 + $0x338] sm:$0xf0]  ;;  %v1888_v60 = vld [vmem:[%s3034_s3 + $0xc] sm:$0xf] }
  0x9d   :  { %1032 = vmatpush.bf16.msra.mxu2 %v1670_v3  ;;  %1045 = vmatpush.bf16.msra.mxu3 %v1798_v15  ;;  %v1722_v3 = vor.u32 %v1972_v2, %v1719_v4  ;;  %v1850_v15 = vor.u32 %v2004_v5, %v1847_v6  ;;  %v1383_v61 = vld [vmem:[%s3034_s3 + $0x18] sm:$0xf0]  ;;  %v1920_v0 = vld [vmem:[%s3034_s3 + $0x10c] sm:$0xf] }
  0x9e   :  { %v1511_v1 = vld [vmem:[%s3034_s3 + $0x118] sm:$0xf0]  ;;  %v1952_v2 = vld [vmem:[%s3034_s3 + $0x20c] sm:$0xf] }
  0x9f   :  { %v1639_v4 = vld [vmem:[%s3034_s3 + $0x218] sm:$0xf0]  ;;  %v1984_v5 = vld [vmem:[%s3034_s3 + $0x30c] sm:$0xf] }
  0xa0   :  { %1007 = vmatpush.bf16.msra.mxu0 %v1398_v23  ;;  %1020 = vmatpush.bf16.msra.mxu1 %v1526_v24  ;;  %v1578_v23 = vor.u32 %v1936_v16, %v1575_v17  ;;  %v1900_v24 = vld [vmem:[%s3034_s3 + $0x6c] sm:$0xf]  ;;  %v1767_v6 = vld [vmem:[%s3034_s3 + $0x318] sm:$0xf0]  ;;  %v1642_v13 = vor.u32 %v1952_v2, %v1639_v4  ;;  %v2065_v2 = vmov 512.0  }
  0xa1   :  { %1033 = vmatpush.bf16.msra.mxu2 %v1654_v28  ;;  %1046 = vmatpush.bf16.msra.mxu3 %v1782_v29  ;;  %v1932_v28 = vld [vmem:[%s3034_s3 + $0x16c] sm:$0xf]  ;;  %v1559_v29 = vld [vmem:[%s3034_s3 + $0x178] sm:$0xf0]  ;;  %v1434_v34 = vor.u32 %v1900_v24, %v1431_v25  ;;  %v1770_v14 = vor.u32 %v1984_v5, %v1767_v6  ;;  %2024 = vrcp.f32 %v2065_v2 }
  0xa2   :  { %v1562_v35 = vor.u32 %v1932_v28, %v1559_v29 }
  0xa4   :  { %1008 = vmatpush.bf16.msra.mxu0 %v1382_v39  ;;  %1021 = vmatpush.bf16.msra.mxu1 %v1510_v40  ;;  %v1818_v39 = vor.u32 %v1996_v32, %v1815_v33  ;;  %v1928_v40 = vld [vmem:[%s3034_s3 + $0x14c] sm:$0xf] }
  0xa5   :  { %1034 = vmatpush.bf16.msra.mxu2 %v1638_v44  ;;  %1047 = vmatpush.bf16.msra.mxu3 %v1766_v45  ;;  %v1992_v44 = vld [vmem:[%s3034_s3 + $0x34c] sm:$0xf]  ;;  %v1799_v45 = vld [vmem:[%s3034_s3 + $0x358] sm:$0xf0] }
  0xa7   :  { %1009 = vmatmul.bf16.vlgmr.msra.gmra.mxu0 %v2529_v9  ;;  %1022 = vmatmul.bf16.vlgmr.msra.gmra.mxu1 %v2531_v10  ;;  %v2025_v4 = vpop.eup %2024 }
  0xa8   :  { %1053 = vmatpush.bf16.msrb.mxu0 %v1498_v46  ;;  %1066 = vmatpush.bf16.msrb.mxu1 %v1626_v47  ;;  %v1418_v46 = vor.u32 %v1896_v36, %v1415_v37  ;;  %v1546_v47 = vor.u32 %v1928_v40, %v1543_v41  ;;  %v1111_v5 = vmul.f32 512.0, %v2025_v4  ;;  %vm1115_vm0 = vweird.f32 %v2025_v4 }
  0xa9   :  { %1079 = vmatpush.bf16.msrb.mxu2 %v1754_v50  ;;  %1092 = vmatpush.bf16.msrb.mxu3 %v1882_v51  ;;  %v1674_v50 = vor.u32 %v1960_v42, %v1671_v43  ;;  %v1802_v51 = vor.u32 %v1992_v44, %v1799_v45 }
  0xaa   :  { %1035 = vmatmul.bf16.vlgmr.msra.gmra.mxu2 %v2533_v11  ;;  %1048 = vmatmul.bf16.vlgmr.msra.gmra.mxu3 %v2535_v12  ;;  %v1112_v6 = vsub.f32 1.0, %v1111_v5 }
  0xac   :  { %1054 = vmatpush.bf16.msrb.mxu0 %v1482_v58  ;;  %1067 = vmatpush.bf16.msrb.mxu1 %v1610_v59  ;;  %v1402_v58 = vor.u32 %v1892_v48, %v1399_v49  ;;  %v1530_v59 = vor.u32 %v1924_v52, %v1527_v53 }
  0xad   :  { %1080 = vmatpush.bf16.msrb.mxu2 %v1738_v62  ;;  %1093 = vmatpush.bf16.msrb.mxu3 %v1866_v63  ;;  %v1658_v62 = vor.u32 %v1956_v54, %v1655_v55  ;;  %v1786_v63 = vor.u32 %v1988_v56, %v1783_v57 }
  0xb0   :  { %1055 = vmatpush.bf16.msrb.mxu0 %v1466_v7  ;;  %1068 = vmatpush.bf16.msrb.mxu1 %v1594_v8  ;;  %v1386_v7 = vor.u32 %v1888_v60, %v1383_v61  ;;  %v1514_v8 = vor.u32 %v1920_v0, %v1511_v1 }
  0xb1   :  { %1081 = vmatpush.bf16.msrb.mxu2 %v1722_v3  ;;  %1094 = vmatpush.bf16.msrb.mxu3 %v1850_v15 }
  0xb4   :  { %1056 = vmatpush.bf16.msrb.mxu0 %v1450_v22  ;;  %1069 = vmatpush.bf16.msrb.mxu1 %v1578_v23 }
  0xb5   :  { %1082 = vmatpush.bf16.msrb.mxu2 %v1706_v26  ;;  %1095 = vmatpush.bf16.msrb.mxu3 %v1834_v27 }
  0xb8   :  { %1057 = vmatpush.bf16.msrb.mxu0 %v1434_v34  ;;  %1070 = vmatpush.bf16.msrb.mxu1 %v1562_v35  ;;  %v247_v34 = vld [vmem:[%s3035_s4] sm:$0xf] }
  0xb9   :  { %1083 = vmatpush.bf16.msrb.mxu2 %v1690_v38  ;;  %1096 = vmatpush.bf16.msrb.mxu3 %v1818_v39  ;;  %v250_v35 = vperm.slane %v247_v34, 1  ;;  %v249_v36 = vperm.slane %v247_v34, 0  ;;  %v251_v37 = vperm.slane %v247_v34, 2  ;;  %v252_v42 = vperm.slane %v247_v34, 3 }
  0xbc   :  { %1058 = vmatpush.bf16.msrb.mxu0 %v1418_v46  ;;  %1071 = vmatpush.bf16.msrb.mxu1 %v1546_v47 }
  0xbd   :  { %1084 = vmatpush.bf16.msrb.mxu2 %v1674_v50  ;;  %1097 = vmatpush.bf16.msrb.mxu3 %v1802_v51 }
  0xc0   :  { %1059 = vmatpush.bf16.msrb.mxu0 %v1402_v58  ;;  %1072 = vmatpush.bf16.msrb.mxu1 %v1530_v59 }
  0xc1   :  { %1085 = vmatpush.bf16.msrb.mxu2 %v1658_v62  ;;  %1098 = vmatpush.bf16.msrb.mxu3 %v1786_v63 }
  0xc4   :  { %1060 = vmatpush.bf16.msrb.mxu0 %v1386_v7  ;;  %1073 = vmatpush.bf16.msrb.mxu1 %v1514_v8  ;;  %v1113_v7 = vmul.f32 %v2025_v4, %v1112_v6 }
  0xc5   :  { %1086 = vmatpush.bf16.msrb.mxu2 %v1642_v13  ;;  %1099 = vmatpush.bf16.msrb.mxu3 %v1770_v14 }
  0xc6   :  { %v1114_v8 = vadd.f32 %v2025_v4, %v1113_v7 }
  0xc7   :  { %1061 = vmatmul.bf16.vlgmr.msrb.gmra.mxu0 %v2529_v9  ;;  %1074 = vmatmul.bf16.vlgmr.msrb.gmra.mxu1 %v2531_v10 }
  0xc8   :  { %1087 = vmatmul.bf16.vlgmr.msrb.gmra.mxu2 %v2533_v11  ;;  %1100 = vmatmul.bf16.vlgmr.msrb.gmra.mxu3 %v2535_v12  ;;  %v1116_v13 = vsel %vm1115_vm0, %v2025_v4, %v1114_v8 }
 0x103   :  { %v906_v3 = vpop.f32.mrf.mxu0  ;;  %v919_v15 = vpop.f32.mrf.mxu1 }
 0x104   :  { %v907_v39 = vadd.f32 %v906_v3, %v249_v36 }
 0x106   :  { %v920_v43 = vadd.f32 %v919_v15, %v907_v39 }
 0x10a   :  { %v932_v16 = vpop.f32.mrf.mxu2  ;;  %v945_v17 = vpop.f32.mrf.mxu3 }
 0x10b   :  { %v908_v18 = vpop.f32.mrf.mxu0  ;;  %v921_v19 = vpop.f32.mrf.mxu1  ;;  %v933_v48 = vadd.f32 %v932_v16, %v920_v43 }
 0x10d   :  { %v946_v52 = vadd.f32 %v945_v17, %v933_v48 }
 0x112   :  { %v934_v20 = vpop.f32.mrf.mxu2  ;;  %v947_v21 = vpop.f32.mrf.mxu3 }
 0x113   :  { %v958_v22 = vpop.f32.mrf.mxu0  ;;  %v971_v23 = vpop.f32.mrf.mxu1 }
 0x114   :  { %v959_v38 = vadd.f32 %v958_v22, %v250_v35 }
 0x116   :  { %v972_v41 = vadd.f32 %v971_v23, %v959_v38 }
 0x11a   :  { %v984_v24 = vpop.f32.mrf.mxu2  ;;  %v997_v25 = vpop.f32.mrf.mxu3 }
 0x11b   :  { %v960_v26 = vpop.f32.mrf.mxu0  ;;  %v973_v9 = vpop.f32.mrf.mxu1  ;;  %v985_v44 = vadd.f32 %v984_v24, %v972_v41 }
 0x11d   :  { %v998_v51 = vadd.f32 %v997_v25, %v985_v44 }
 0x11f   :  { %v1105_v57 = vadd.f32 %v998_v51, %v946_v52 }
 0x122   :  { %v986_v27 = vpop.f32.mrf.mxu2  ;;  %v999_v10 = vpop.f32.mrf.mxu3 }
 0x124   :  { %v1010_v28 = vpop.f32.mrf.mxu0  ;;  %v1023_v11 = vpop.f32.mrf.mxu1 }
 0x125   :  { %v1011_v40 = vadd.f32 %v1010_v28, %v251_v37 }
 0x127   :  { %v1024_v45 = vadd.f32 %v1023_v11, %v1011_v40 }
 0x12c   :  { %v1012_v30 = vpop.f32.mrf.mxu0  ;;  %v1025_v31 = vpop.f32.mrf.mxu1 }
 0x12d   :  { %v1036_v29 = vpop.f32.mrf.mxu2  ;;  %v1049_v12 = vpop.f32.mrf.mxu3  ;;  %v1161_v31 = vld [vmem:[%s3037_s6] sm:$0xf] }
 0x12e   :  { %v1037_v49 = vadd.f32 %v1036_v29, %v1024_v45  ;;  %v1163_v37 = vperm.slane %v1161_v31, 0  ;;  %v1164_v39 = vperm.slane %v1161_v31, 1  ;;  %v1165_v40 = vperm.slane %v1161_v31, 2 }
 0x12f   :  { %v1166_v41 = vperm.slane %v1161_v31, 3 }
 0x130   :  { %v1050_v53 = vadd.f32 %v1049_v12, %v1037_v49  ;;  %v1147_v12 = vld [vmem:[%s3036_s5] sm:$0xf]  ;;  %s2066_s5 = smov [#allocation2]  }
 0x131   :  { %v1150_v34 = vperm.slane %v1147_v12, 1  ;;  %v1151_v35 = vperm.slane %v1147_v12, 2  ;;  %v1152_v36 = vperm.slane %v1147_v12, 3  ;;  %s1360_s6 = sshll.u32 %s2066_s5, 4  ;;  %s1361_s6 = int_to_ptr.vmem [resolvable:$true] %s1360_s6 }
 0x132   :  { %v1106_v61 = vadd.f32 %v1105_v57, %v1050_v53 }
 0x135   :  { %v1038_v32 = vpop.f32.mrf.mxu2  ;;  %v1051_v33 = vpop.f32.mrf.mxu3 }
 0x136   :  { %v1149_v32 = vperm.slane %v1147_v12, 0 }
 0x144   :  { %v1062_v46 = vpop.f32.mrf.mxu0  ;;  %v1075_v47 = vpop.f32.mrf.mxu1 }
 0x145   :  { %v1063_v50 = vadd.f32 %v1062_v46, %v252_v42 }
 0x147   :  { %v1076_v54 = vadd.f32 %v1075_v47, %v1063_v50 }
 0x14b   :  { %v1088_v55 = vpop.f32.mrf.mxu2  ;;  %v1101_v56 = vpop.f32.mrf.mxu3 }
 0x14c   :  { %v1089_v58 = vadd.f32 %v1088_v55, %v1076_v54  ;;  %v1064_v59 = vpop.f32.mrf.mxu0  ;;  %v1077_v60 = vpop.f32.mrf.mxu1 }
 0x14e   :  { %v1102_v62 = vadd.f32 %v1101_v56, %v1089_v58 }
 0x150   :  { %v1107_v63 = vadd.f32 %v1106_v61, %v1102_v62 }
 0x152   :  { %1108 = vadd.xlane.f32.xlu1 %v1107_v63 }
 0x153   :  { %v1090_v0 = vpop.f32.mrf.mxu2  ;;  %v1103_v1 = vpop.f32.mrf.mxu3 }
 0x1c5   :  { %v1109_v14 = vpop.xlane.xlu1 %1108 }
 0x1c6   :  { %v1117_v3 = vmul.f32 %v1116_v13, %v1109_v14 }
 0x1c8   :  { %v1118_v15 = vsub.f32 %v946_v52, %v1117_v3  ;;  %v1119_v16 = vsub.f32 %v998_v51, %v1117_v3  ;;  %v1120_v17 = vsub.f32 %v1050_v53, %v1117_v3  ;;  %v1121_v18 = vsub.f32 %v1102_v62, %v1117_v3 }
 0x1ca   :  { %v1122_v19 = vmul.f32 %v1118_v15, %v1118_v15  ;;  %v1123_v20 = vmul.f32 %v1119_v16, %v1119_v16  ;;  %v1124_v21 = vmul.f32 %v1120_v17, %v1120_v17  ;;  %v1125_v23 = vmul.f32 %v1121_v18, %v1121_v18 }
 0x1cc   :  { %v1126_v22 = vadd.f32 %v1123_v20, %v1122_v19 }
 0x1ce   :  { %v1127_v24 = vadd.f32 %v1126_v22, %v1124_v21 }
 0x1d0   :  { %v1128_v25 = vadd.f32 %v1127_v24, %v1125_v23 }
 0x1d2   :  { %1129 = vadd.xlane.f32.xlu2 %v1128_v25 }
 0x245   :  { %v1130_v26 = vpop.xlane.xlu2 %1129 }
 0x246   :  { %v1131_v9 = vmul.f32 %v1130_v26, %v1116_v13 }
 0x248   :  { %v1132_v27 = vadd.f32 1e-05, %v1131_v9 }
 0x24a   :  { %2026 = vrsqrt.f32 %v1132_v27  ;;  %vm1139_vm2 = vweird.f32 %v1132_v27 }
 0x250   :  { %v2027_v10 = vpop.eup %2026 }
 0x251   :  { %v1134_v28 = vmul.f32 %v2027_v10, %v1132_v27  ;;  %vm1140_vm1 = vweird.f32 %v2027_v10 }
 0x252   :  { %vm1141_vm3 = vmor %vm1139_vm2, %vm1140_vm1 }
 0x253   :  { %v1135_v11 = vmul.f32 %v2027_v10, %v1134_v28 }
 0x255   :  { %v1136_v29 = vmul.f32 0.5, %v1135_v11 }
 0x257   :  { %v1137_v30 = vsub.f32 1.5, %v1136_v29 }
 0x259   :  { %v1138_v33 = vmul.f32 %v2027_v10, %v1137_v30 }
 0x25b   :  { %v1142_v38 = vsel %vm1141_vm3, %v2027_v10, %v1138_v33 }
 0x25c   :  { %v1143_v42 = vmul.f32 %v1142_v38, %v1118_v15  ;;  %v1144_v43 = vmul.f32 %v1142_v38, %v1119_v16  ;;  %v1145_v44 = vmul.f32 %v1142_v38, %v1120_v17  ;;  %v1146_v45 = vmul.f32 %v1142_v38, %v1121_v18 }
 0x25e   :  { %v1157_v46 = vmul.f32 %v1149_v32, %v1143_v42  ;;  %v1158_v47 = vmul.f32 %v1150_v34, %v1144_v43  ;;  %v1159_v48 = vmul.f32 %v1151_v35, %v1145_v44  ;;  %v1160_v49 = vmul.f32 %v1152_v36, %v1146_v45 }
 0x260   :  { %v2922_v50 = vadd.f32 %v1163_v37, %v1157_v46  ;;  %v2924_v51 = vadd.f32 %v1164_v39, %v1158_v47  ;;  %v2926_v52 = vadd.f32 %v1165_v40, %v1159_v48  ;;  %v2928_v53 = vadd.f32 %v1166_v41, %v1160_v49 }
 0x262   :  { %v2931_v54 = vmul.f32 0.70710677, %v2922_v50  ;;  %v2934_v55 = vmul.f32 0.70710677, %v2924_v51  ;;  %v2937_v56 = vmul.f32 0.70710677, %v2926_v52 }
 0x263   :  { %v2940_v57 = vmul.f32 0.70710677, %v2928_v53 }
 0x264   :  { %v1183_v58 = vmul.f32 %v2931_v54, %v2931_v54  ;;  %v1223_v59 = vmul.f32 %v2934_v55, %v2934_v55  ;;  %v1263_v60 = vmul.f32 %v2937_v56, %v2937_v56 }
 0x265   :  { %v1303_v61 = vmul.f32 %v2940_v57, %v2940_v57 }
 0x266   :  { %v2950_v62 = vmin.f32 %v1183_v58, 16.0  ;;  %v2952_v63 = vmin.f32 %v1223_v59, 16.0  ;;  %v2954_v0 = vmin.f32 %v1263_v60, 16.0 }
 0x267   :  { %v2956_v1 = vmin.f32 %v1303_v61, 16.0 }
 0x268   :  { %v1185_v2 = vmul.f32 2.1237322e-06, %v2950_v62  ;;  %v1196_v4 = vmul.f32 3.8918573e-05, %v2950_v62  ;;  %v1225_v5 = vmul.f32 2.1237322e-06, %v2952_v63 }
 0x269   :  { %v1236_v6 = vmul.f32 3.8918573e-05, %v2952_v63  ;;  %v1265_v7 = vmul.f32 2.1237322e-06, %v2954_v0  ;;  %v1276_v8 = vmul.f32 3.8918573e-05, %v2954_v0 }
 0x26a   :  { %v1186_v13 = vadd.f32 0.00028619796, %v1185_v2  ;;  %v1197_v14 = vadd.f32 0.001143296, %v1196_v4  ;;  %v1226_v3 = vadd.f32 0.00028619796, %v1225_v5 }
 0x26b   :  { %v1237_v15 = vadd.f32 0.001143296, %v1236_v6  ;;  %v1266_v16 = vadd.f32 0.00028619796, %v1265_v7  ;;  %v1277_v17 = vadd.f32 0.001143296, %v1276_v8 }
 0x26c   :  { %v1187_v18 = vmul.f32 %v1186_v13, %v2950_v62  ;;  %v1198_v19 = vmul.f32 %v1197_v14, %v2950_v62  ;;  %v1227_v20 = vmul.f32 %v1226_v3, %v2952_v63  ;;  %v1305_v21 = vmul.f32 2.1237322e-06, %v2956_v1 }
 0x26d   :  { %v1238_v22 = vmul.f32 %v1237_v15, %v2952_v63  ;;  %v1267_v23 = vmul.f32 %v1266_v16, %v2954_v0  ;;  %v1278_v24 = vmul.f32 %v1277_v17, %v2954_v0  ;;  %v1316_v25 = vmul.f32 3.8918573e-05, %v2956_v1 }
 0x26e   :  { %v1188_v26 = vadd.f32 0.0036580483, %v1187_v18  ;;  %v1199_v9 = vadd.f32 0.014752088, %v1198_v19  ;;  %v1228_v27 = vadd.f32 0.0036580483, %v1227_v20 }
 0x26f   :  { %v1239_v10 = vadd.f32 0.014752088, %v1238_v22  ;;  %v1268_v28 = vadd.f32 0.0036580483, %v1267_v23  ;;  %v1279_v11 = vadd.f32 0.014752088, %v1278_v24 }
 0x270   :  { %v1189_v29 = vmul.f32 %v1188_v26, %v2950_v62  ;;  %v1200_v12 = vmul.f32 %v1199_v9, %v2950_v62  ;;  %v1229_v30 = vmul.f32 %v1228_v27, %v2952_v63  ;;  %v1306_v31 = vadd.f32 0.00028619796, %v1305_v21 }
 0x271   :  { %v1240_v32 = vmul.f32 %v1239_v10, %v2952_v63  ;;  %v1269_v33 = vmul.f32 %v1268_v28, %v2954_v0  ;;  %v1280_v34 = vmul.f32 %v1279_v11, %v2954_v0  ;;  %v1317_v35 = vadd.f32 0.001143296, %v1316_v25 }
 0x272   :  { %v1190_v36 = vadd.f32 0.05243302, %v1189_v29  ;;  %v1201_v37 = vadd.f32 0.112945676, %v1200_v12  ;;  %v1230_v38 = vadd.f32 0.05243302, %v1229_v30  ;;  %v1307_v41 = vmul.f32 %v1306_v31, %v2956_v1 }
 0x273   :  { %v1241_v39 = vadd.f32 0.112945676, %v1240_v32  ;;  %v1281_v40 = vadd.f32 0.112945676, %v1280_v34  ;;  %v1318_v42 = vmul.f32 %v1317_v35, %v2956_v1  ;;  %v1270_v45 = vadd.f32 0.05243302, %v1269_v33 }
 0x274   :  { %v1191_v43 = vmul.f32 %v1190_v36, %v2950_v62  ;;  %v1202_v44 = vmul.f32 %v1201_v37, %v2950_v62  ;;  %v1231_v46 = vmul.f32 %v1230_v38, %v2952_v63  ;;  %v1308_v61 = vadd.f32 0.0036580483, %v1307_v41 }
 0x275   :  { %v1242_v47 = vmul.f32 %v1241_v39, %v2952_v63  ;;  %v1282_v48 = vmul.f32 %v1281_v40, %v2954_v0  ;;  %v1319_v49 = vadd.f32 0.014752088, %v1318_v42  ;;  %v1271_v6 = vmul.f32 %v1270_v45, %v2954_v0 }
 0x276   :  { %v1203_v58 = vadd.f32 0.4994258, %v1202_v44  ;;  %v1192_v4 = vadd.f32 0.18741608, %v1191_v43  ;;  %v1232_v7 = vadd.f32 0.18741608, %v1231_v46  ;;  %v1309_v17 = vmul.f32 %v1308_v61, %v2956_v1 }
 0x277   :  { %v1243_v59 = vadd.f32 0.4994258, %v1242_v47  ;;  %v1283_v60 = vadd.f32 0.4994258, %v1282_v48  ;;  %v1320_v2 = vmul.f32 %v1319_v49, %v2956_v1  ;;  %v1272_v19 = vadd.f32 0.18741608, %v1271_v6 }
 0x278   :  { %v1204_v5 = vmul.f32 %v1203_v58, %v2950_v62  ;;  %v1193_v18 = vmul.f32 %v1192_v4, %v2950_v62  ;;  %v1233_v20 = vmul.f32 %v1232_v7, %v2952_v63  ;;  %v1310_v22 = vadd.f32 0.05243302, %v1309_v17 }
 0x279   :  { %v1244_v8 = vmul.f32 %v1243_v59, %v2952_v63  ;;  %v1284_v13 = vmul.f32 %v1283_v60, %v2954_v0  ;;  %v1321_v14 = vadd.f32 0.112945676, %v1320_v2  ;;  %v1273_v24 = vmul.f32 %v1272_v19, %v2954_v0 }
 0x27a   :  { %v1205_v3 = vadd.f32 1.0, %v1204_v5  ;;  %v1194_v23 = vadd.f32 1.1283791, %v1193_v18  ;;  %v1234_v25 = vadd.f32 1.1283791, %v1233_v20  ;;  %v1311_v62 = vmul.f32 %v1310_v22, %v2956_v1 }
 0x27b   :  { %v1245_v15 = vadd.f32 1.0, %v1244_v8  ;;  %v2990_v16 = vadd.f32 1.0, %v1284_v13  ;;  %v1322_v21 = vmul.f32 %v1321_v14, %v2956_v1  ;;  %v1274_v12 = vadd.f32 1.1283791, %v1273_v24 }
 0x27c   :  { %2028 = vrcp.f32 %v1205_v3  ;;  %v1215_v27 = vand.u32 2147483647, %v1205_v3  ;;  %v1195_v63 = vmul.f32 %v1194_v23, %v2931_v54  ;;  %vm1211_vm4 = vweird.f32 %v1205_v3 }
 0x27d   :  { %2030 = vrcp.f32 %v1245_v15  ;;  %v1323_v26 = vadd.f32 0.4994258, %v1322_v21  ;;  %v1217_v32 = vand.u32 2147483648, %v1205_v3  ;;  %v1235_v0 = vmul.f32 %v1234_v25, %v2934_v55 }
 0x27e   :  { %2032 = vrcp.f32 %v2990_v16  ;;  %vm3004_vm5 = vcmp.eq.f32.partialorder %v1215_v27, 8.507059e+37  ;;  %vm1251_vm6 = vweird.f32 %v1245_v15  ;;  %v1257_v54 = vand.u32 2147483648, %v1245_v15 }
 0x27f   :  { %v1324_v11 = vmul.f32 %v1323_v26, %v2956_v1  ;;  %v1255_v39 = vand.u32 2147483647, %v1245_v15  ;;  %v1218_v41 = vor.u32 1.1754944e-38, %v1217_v32  ;;  %v1297_v42 = vand.u32 2147483648, %v2990_v16 }
 0x280   :  { %v1312_v43 = vadd.f32 0.18741608, %v1311_v62  ;;  %v1295_v46 = vand.u32 2147483647, %v2990_v16  ;;  %v1258_v48 = vor.u32 1.1754944e-38, %v1257_v54  ;;  %v1275_v49 = vmul.f32 %v1274_v12, %v2937_v56 }
 0x281   :  { %v3002_v33 = vadd.f32 1.0, %v1324_v11  ;;  %vm1291_vm12 = vweird.f32 %v2990_v16  ;;  %vm1256_vm13 = vcmp.eq.f32.partialorder %v1255_v39, 8.507059e+37  ;;  %v1298_v5 = vor.u32 1.1754944e-38, %v1297_v42 }
 0x282   :  { %v2029_v9 = vpop.eup %2028  ;;  %v1313_v6 = vmul.f32 %v1312_v43, %v2956_v1  ;;  %vm1296_vm15 = vcmp.eq.f32.partialorder %v1295_v46, 8.507059e+37  ;;  %v1175_v13 = vmul.f32 0.5, %v2922_v50  ;;  %v1177_v25 = vmul.f32 0.5, %v2926_v52 }
 0x283   :  { %v2031_v10 = vpop.eup %2030  ;;  %v1207_v28 = vmul.f32 %v2029_v9, %v1205_v3  ;;  %vm1212_vm7 = vweird.f32 %v2029_v9  ;;  %2034 = vrcp.f32 %v3002_v33  ;;  %v1335_v20 = vand.u32 2147483647, %v3002_v33 }
 0x284   :  { %v1247_v29 = vmul.f32 %v2031_v10, %v1245_v15  ;;  %v2033_v30 = vpop.eup %2032  ;;  %vm1252_vm8 = vweird.f32 %v2031_v10  ;;  %vm1213_vm9 = vmor %vm1211_vm4, %vm1212_vm7  ;;  %v1176_v15 = vmul.f32 0.5, %v2924_v51  ;;  %v1314_v19 = vadd.f32 1.1283791, %v1313_v6 }
 0x285   :  { %v1208_v31 = vsub.f32 1.0, %v1207_v28  ;;  %v1287_v36 = vmul.f32 %v2033_v30, %v2990_v16  ;;  %vm1292_vm10 = vweird.f32 %v2033_v30  ;;  %vm1253_vm11 = vmor %vm1251_vm6, %vm1252_vm8  ;;  %v1337_v21 = vand.u32 2147483648, %v3002_v33 }
 0x286   :  { %v1248_v35 = vsub.f32 1.0, %v1247_v29  ;;  %vm1293_vm14 = vmor %vm1291_vm12, %vm1292_vm10  ;;  %vm1331_vm1 = vweird.f32 %v3002_v33  ;;  %vm1336_vm3 = vcmp.eq.f32.partialorder %v1335_v20, 8.507059e+37  ;;  %v1178_v52 = vmul.f32 0.5, %v2928_v53 }
 0x287   :  { %v1209_v37 = vmul.f32 %v2029_v9, %v1208_v31  ;;  %v1288_v40 = vsub.f32 1.0, %v1287_v36  ;;  %v1338_v27 = vor.u32 1.1754944e-38, %v1337_v21 }
 0x288   :  { %v1249_v38 = vmul.f32 %v2031_v10, %v1248_v35 }
 0x289   :  { %v1210_v55 = vadd.f32 %v2029_v9, %v1209_v37  ;;  %v1289_v45 = vmul.f32 %v2033_v30, %v1288_v40  ;;  %v2035_v61 = vpop.eup %2034 }
 0x28a   :  { %v1250_v44 = vadd.f32 %v2031_v10, %v1249_v38  ;;  %v1327_v56 = vmul.f32 %v2035_v61, %v3002_v33  ;;  %vm1332_vm0 = vweird.f32 %v2035_v61 }
 0x28b   :  { %v1214_v47 = vsel %vm1213_vm9, %v2029_v9, %v1210_v55  ;;  %v1290_v60 = vadd.f32 %v2033_v30, %v1289_v45  ;;  %vm1333_vm2 = vmor %vm1331_vm1, %vm1332_vm0 }
 0x28c   :  { %v1219_v58 = vsel %vm3004_vm5, %v1218_v41, %v1214_v47  ;;  %v1254_v59 = vsel %vm1253_vm11, %v2031_v10, %v1250_v44  ;;  %v1328_v18 = vsub.f32 1.0, %v1327_v56  ;;  %v1315_v10 = vmul.f32 %v1314_v19, %v2940_v57 }
 0x28d   :  { %v1220_v2 = vmul.f32 %v1219_v58, %v1195_v63  ;;  %v1259_v4 = vsel %vm1256_vm13, %v1258_v48, %v1254_v59  ;;  %v1294_v8 = vsel %vm1293_vm14, %v2033_v30, %v1290_v60 }
 0x28e   :  { %v1260_v7 = vmul.f32 %v1259_v4, %v1235_v0  ;;  %v1299_v3 = vsel %vm1296_vm15, %v1298_v5, %v1294_v8  ;;  %v1329_v23 = vmul.f32 %v2035_v61, %v1328_v18 }
 0x28f   :  { %v1883_v14 = vclamps-f32 %v1220_v2, 1.0  ;;  %v1300_v17 = vmul.f32 %v1299_v3, %v1275_v49 }
 0x290   :  { %v1884_v16 = vclamps-f32 %v1260_v7, 1.0  ;;  %v1330_v26 = vadd.f32 %v2035_v61, %v1329_v23 }
 0x291   :  { %v1343_v1 = vadd.f32 1.0, %v1883_v14  ;;  %v1885_v22 = vclamps-f32 %v1300_v17, 1.0 }
 0x292   :  { %v1344_v24 = vadd.f32 1.0, %v1884_v16  ;;  %v1334_v28 = vsel %vm1333_vm2, %v2035_v61, %v1330_v26 }
 0x293   :  { %v1347_v50 = vmul.f32 %v1343_v1, %v1175_v13  ;;  %v1345_v51 = vadd.f32 1.0, %v1885_v22  ;;  %v1339_v11 = vsel %vm1336_vm3, %v1338_v27, %v1334_v28 }
 0x294   :  { %v1348_v9 = vmul.f32 %v1344_v24, %v1176_v15  ;;  %v1340_v63 = vmul.f32 %v1339_v11, %v1315_v10 }
 0x295   :  { %1351 = vst [vmem:[#allocation2] sm:$0xff] %v1347_v50  ;;  %v1349_v62 = vmul.f32 %v1345_v51, %v1177_v25 }
 0x296   :  { %1352 = vst [vmem:[#allocation2 + $0x8] sm:$0xff] %v1348_v9  ;;  %v1886_v29 = vclamps-f32 %v1340_v63, 1.0 }
 0x297   :  { %1353 = vst [vmem:[#allocation2 + $0x10] sm:$0xff] %v1349_v62 }
 0x298   :  { %v1346_v12 = vadd.f32 1.0, %v1886_v29 }
 0x29a   :  { %v1350_v30 = vmul.f32 %v1346_v12, %v1178_v52 }
 0x29c   :  { %1354 = vst [vmem:[#allocation2 + $0x18] sm:$0xff] %v1350_v30 }
 0x29d   :  { %1365 = dma.vmem_to_hbm [thread:$0]  %s1361_s6, 512, %s1363_s24, [#allocation3]  }
 0x29e   :  { %2060 = dma.done.wait [#allocation3], 512  }
 0x29f   :  { %2061 = vsyncadd [#allocation3], 4294966784 }
 0x2a0   :  { %1370 = vsyncpa [#allocation3], 1 }

</bundles_post_ra>
